<compile_context>
chip_gen: v7x
topology: tpu7x:2x2x1
jax: 0.10.0
libtpu: 0.0.40
codegen_flags: <defaults>
</compile_context>

<pallas_src>
import functools

import jax
import jax.numpy as jnp
from jax import lax
from jax.experimental import pallas as pl
from jax.experimental.pallas import tpu as pltpu

NEG_LARGE = -1e30  # finite "-inf" for masking (avoids inf-inf NaNs)


def _deepwalk_kernel(n_real, et_ref, ew_ref, tab_ref, loss_ref, m_scr, l_scr):
    """Grid = (row_tiles, vocab_tiles); vocab axis is the (last) reduction axis.

    et_ref/ew_ref : (TM, D)  gathered target / window embeddings for this row tile
    tab_ref       : (TN, D)  chunk of the embedding table
    loss_ref      : (1, TM)  per-row loss (lane-dense), written on last vocab tile
    m_scr/l_scr   : (1, TM)  online-logsumexp running max / running sum-of-exp
    """
    n = pl.program_id(1)
    n_last = pl.num_programs(1) - 1
    tn = tab_ref.shape[0]

    @pl.when(n == 0)
    def _init():
        m_scr[...] = jnp.full_like(m_scr, NEG_LARGE)
        l_scr[...] = jnp.zeros_like(l_scr)

    et = et_ref[...]    # (TM, D)
    tab = tab_ref[...]  # (TN, D)

    # logits^T : (TN, TM).  Both operands contract on their minor-most dim (D),
    # so no explicit transpose of the table is needed.
    logits_t = lax.dot_general(
        tab, et,
        dimension_numbers=(((1,), (1,)), ((), ())),
        precision=lax.Precision.HIGHEST,
        preferred_element_type=jnp.float32)

    # Mask padded vocabulary rows (zero-padded table rows would otherwise
    # contribute exp(0) = 1 to the partition function).
    if n_real % tn != 0:
        vocab_idx = lax.broadcasted_iota(jnp.int32, logits_t.shape, 0) + n * tn
        logits_t = jnp.where(vocab_idx < n_real, logits_t, NEG_LARGE)

    # Online logsumexp over the vocabulary; reductions along sublanes keep the
    # per-row state lane-dense as (1, TM).
    m_prev = m_scr[...]
    m_new = jnp.maximum(m_prev, jnp.max(logits_t, axis=0, keepdims=True))
    alpha = jnp.exp(m_prev - m_new)
    p = jnp.exp(logits_t - m_new)
    l_scr[...] = alpha * l_scr[...] + jnp.sum(p, axis=0, keepdims=True)
    m_scr[...] = m_new

    @pl.when(n == n_last)
    def _finalize():
        # Per-row <target, window> dot, laid out lane-dense as (1, TM) via a
        # skinny ones-matmul (avoids a sublane->lane relayout).
        prod = et_ref[...] * ew_ref[...]                       # (TM, D)
        ones_row = jnp.ones((1, prod.shape[1]), jnp.float32)
        row_dot = lax.dot_general(
            ones_row, prod,
            dimension_numbers=(((1,), (1,)), ((), ())),
            precision=lax.Precision.HIGHEST,
            preferred_element_type=jnp.float32)                # (1, TM)
        lse = m_scr[...] + jnp.log(l_scr[...])                 # (1, TM)
        # loss = -log(score / scale) = logsumexp(logits) - <e_t, e_w>
        loss_ref[...] = lse - row_dot


def deepwalk_forward(embed_weight, target, window, *, tm=128, tn=256):
    """embed_weight: (N, D) f32; target, window: (B, T) int32 -> scalar loss."""
    B, T = target.shape
    N, D = embed_weight.shape
    M = B * T
    m_pad = pl.cdiv(M, tm) * tm
    n_pad = pl.cdiv(N, tn) * tn

    # Embedding lookups (single HBM pass of glue).
    # TODO(synk): could be fused into the kernel via scalar-prefetch + pl.Element
    # row-gather; negligible at these sizes.
    et = jnp.take(embed_weight, target.reshape(-1), axis=0)    # (M, D)
    ew = jnp.take(embed_weight, window.reshape(-1), axis=0)    # (M, D)
    et = jnp.pad(et, ((0, m_pad - M), (0, 0)))
    ew = jnp.pad(ew, ((0, m_pad - M), (0, 0)))
    tab = jnp.pad(embed_weight, ((0, n_pad - N), (0, 0)))

    kernel = functools.partial(_deepwalk_kernel, N)

    per_row = pl.pallas_call(
        kernel,
        out_shape=jax.ShapeDtypeStruct((1, m_pad), jnp.float32),
        grid_spec=pltpu.PrefetchScalarGridSpec(
            num_scalar_prefetch=0,
            grid=(m_pad // tm, n_pad // tn),      # (row tiles, vocab tiles)
            in_specs=[
                pl.BlockSpec((tm, D), lambda m, n: (m, 0)),   # target rows
                pl.BlockSpec((tm, D), lambda m, n: (m, 0)),   # window rows
                pl.BlockSpec((tn, D), lambda m, n: (n, 0)),   # table chunk
            ],
            out_specs=pl.BlockSpec((1, tm), lambda m, n: (0, m)),
            scratch_shapes=[
                pltpu.VMEM((1, tm), jnp.float32),   # running max
                pltpu.VMEM((1, tm), jnp.float32),   # running sum of exp
            ],
        ),
        compiler_params=pltpu.CompilerParams(
            dimension_semantics=("parallel", "arbitrary"),
            vmem_limit_bytes=32 * 1024 * 1024,
        ),
    )(et, ew, tab)

    # Drop padded rows, then torch.mean(torch.mean(loss, dim=1)).
    per_pos = per_row[0, :M].reshape(B, T)
    return jnp.mean(jnp.mean(per_pos, axis=1))


def deepwalk_reference(embed_weight, target, window):
    """Pure-JAX reference mirroring the PyTorch forward exactly."""
    et = jnp.take(embed_weight, target, axis=0)                       # (B, T, D)
    ew = jnp.take(embed_weight, window, axis=0)                       # (B, T, D)
    emb_all = jnp.transpose(embed_weight)[None].repeat(target.shape[0], axis=0)
    score = jnp.exp(jnp.sum(et * ew, axis=2))                         # (B, T)
    logits = jnp.einsum('btd,bdn->btn', et, emb_all,
                        precision=jax.lax.Precision.HIGHEST)
    scale = jnp.sum(jnp.exp(logits), axis=2)                          # (B, T)
    loss = -jnp.log(score / scale)
    return jnp.mean(jnp.mean(loss, axis=1))


if __name__ == "__main__":
    # Synthetic config: 16 nodes, embed_dim=32, batch=2, walk/window length=8.
    N_NODES, EMBED_DIM = 16, 32
    BATCH, SEQ = 2, 8

    key = jax.random.PRNGKey(0)
    k_w, k_t, k_win = jax.random.split(key, 3)

    # nn.Embedding default init: N(0, 1)
    embed_weight = jax.random.normal(k_w, (N_NODES, EMBED_DIM), dtype=jnp.float32)
    target = jax.random.randint(k_t, (BATCH, SEQ), 0, N_NODES, dtype=jnp.int32)
    window = jax.random.randint(k_win, (BATCH, SEQ), 0, N_NODES, dtype=jnp.int32)

    out = jax.block_until_ready(deepwalk_forward(embed_weight, target, window))
    ref = jax.block_until_ready(deepwalk_reference(embed_weight, target, window))

    assert out.shape == (), f"expected scalar, got {out.shape}"
    assert jnp.allclose(out, ref, rtol=1e-4, atol=1e-4), (out, ref)
    print("KERNEL_OK")
</pallas_src>

<mosaic_0001>
module attributes {stable_mosaic.version = 11 : i64} {
  func.func @_deepwalk_kernel(%arg0: i32, %arg1: i32, %arg2: memref<128x32xf32, #tpu.memory_space<vmem>>, %arg3: memref<128x32xf32, #tpu.memory_space<vmem>>, %arg4: memref<256x32xf32, #tpu.memory_space<vmem>>, %arg5: memref<1x128xf32, #tpu.memory_space<vmem>>, %arg6: memref<1x128xf32, #tpu.memory_space<vmem>>, %arg7: memref<1x128xf32, #tpu.memory_space<vmem>>) attributes {dimension_semantics = [#tpu.dimension_semantics<parallel>, #tpu.dimension_semantics<arbitrary>], iteration_bounds = array<i64: 1, 1>, scalar_prefetch = 0 : i64, scratch_operands = 2 : i64, tpu.core_type = #tpu.core_type<tc>, window_params = [{transform_indices = @transform_0, window_bounds = array<i64: 128, 32>}, {transform_indices = @transform_1, window_bounds = array<i64: 128, 32>}, {transform_indices = @transform_2, window_bounds = array<i64: 256, 32>}, {transform_indices = @transform_3, window_bounds = array<i64: 1, 128>}]} {
    %c0_i32 = arith.constant 0 : i32
    %0 = arith.cmpi eq, %arg1, %c0_i32 : i32
    %1 = arith.extui %0 : i1 to i32
    %c0_i32_0 = arith.constant 0 : i32
    %2 = arith.cmpi ne, %1, %c0_i32_0 : i32
    scf.if %2 {
      %cst_17 = arith.constant -1.000000e+30 : f32
      %33 = vector.broadcast %cst_17 : f32 to vector<1x128xf32>
      %c0_18 = arith.constant 0 : index
      %c0_19 = arith.constant 0 : index
      %34 = vector.load %arg6[%c0_18, %c0_19] : memref<1x128xf32, #tpu.memory_space<vmem>>, vector<1x128xf32>
      tpu.vector_store %arg6[%c0_18, %c0_19], %33 {strides = array<i32>} : memref<1x128xf32, #tpu.memory_space<vmem>>, vector<1x128xf32>,
      %cst_20 = arith.constant 0.000000e+00 : f32
      %35 = vector.broadcast %cst_20 : f32 to vector<1x128xf32>
      %c0_21 = arith.constant 0 : index
      %c0_22 = arith.constant 0 : index
      %36 = vector.load %arg7[%c0_21, %c0_22] : memref<1x128xf32, #tpu.memory_space<vmem>>, vector<1x128xf32>
      tpu.vector_store %arg7[%c0_21, %c0_22], %35 {strides = array<i32>} : memref<1x128xf32, #tpu.memory_space<vmem>>, vector<1x128xf32>,
    } else {
    }
    %c0 = arith.constant 0 : index
    %c0_1 = arith.constant 0 : index
    %3 = vector.load %arg2[%c0, %c0_1] : memref<128x32xf32, #tpu.memory_space<vmem>>, vector<128x32xf32>
    %c0_2 = arith.constant 0 : index
    %c0_3 = arith.constant 0 : index
    %4 = vector.load %arg4[%c0_2, %c0_3] : memref<256x32xf32, #tpu.memory_space<vmem>>, vector<256x32xf32>
    %cst = arith.constant dense<0.000000e+00> : vector<256x128xf32>
    %5 = tpu.matmul %4, %3, %cst {dimension_numbers = #tpu.dot_dimension_numbers<[1], [1], [0], [0], [0, 0, 1, 0], [], []>, precision = #tpu.contract_precision<fp32>} : vector<256x32xf32>, vector<128x32xf32>, vector<256x128xf32> -> vector<256x128xf32>
    %6 = tpu.iota {dimensions = array<i32: 0>} : vector<256x128xi32>
    %c256_i32 = arith.constant 256 : i32
    %7 = arith.muli %arg1, %c256_i32 : i32
    %8 = vector.broadcast %7 : i32 to vector<256x128xi32>
    %9 = arith.addi %6, %8 : vector<256x128xi32>
    %c16_i32 = arith.constant 16 : i32
    %10 = vector.broadcast %c16_i32 : i32 to vector<256x128xi32>
    %11 = arith.cmpi slt, %9, %10 : vector<256x128xi32>
    %cst_4 = arith.constant -1.000000e+30 : f32
    %12 = vector.broadcast %cst_4 : f32 to vector<256x128xf32>
    %13 = arith.select %11, %5, %12 : vector<256x128xi1>, vector<256x128xf32>
    %c0_5 = arith.constant 0 : index
    %c0_6 = arith.constant 0 : index
    %14 = vector.load %arg6[%c0_5, %c0_6] : memref<1x128xf32, #tpu.memory_space<vmem>>, vector<1x128xf32>
    %cst_7 = arith.constant dense<0xFF800000> : vector<128xf32>
    %15 = vector.multi_reduction <maximumf>, %13, %cst_7 [0] : vector<256x128xf32> to vector<128xf32>
    %16 = vector.shape_cast %15 : vector<128xf32> to vector<1x128xf32>
    %17 = arith.maximumf %14, %16 : vector<1x128xf32>
    %18 = arith.subf %14, %17 : vector<1x128xf32>
    %19 = math.exp %18 : vector<1x128xf32>
    %20 = vector.broadcast %17 : vector<1x128xf32> to vector<256x128xf32>
    %21 = arith.subf %13, %20 : vector<256x128xf32>
    %22 = math.exp %21 : vector<256x128xf32>
    %c0_8 = arith.constant 0 : index
    %c0_9 = arith.constant 0 : index
    %23 = vector.load %arg7[%c0_8, %c0_9] : memref<1x128xf32, #tpu.memory_space<vmem>>, vector<1x128xf32>
    %24 = arith.mulf %19, %23 : vector<1x128xf32>
    %cst_10 = arith.constant dense<0.000000e+00> : vector<128xf32>
    %25 = vector.multi_reduction <add>, %22, %cst_10 [0] : vector<256x128xf32> to vector<128xf32>
    %26 = vector.shape_cast %25 : vector<128xf32> to vector<1x128xf32>
    %27 = arith.addf %24, %26 : vector<1x128xf32>
    %c0_11 = arith.constant 0 : index
    %c0_12 = arith.constant 0 : index
    %28 = vector.load %arg7[%c0_11, %c0_12] : memref<1x128xf32, #tpu.memory_space<vmem>>, vector<1x128xf32>
    tpu.vector_store %arg7[%c0_11, %c0_12], %27 {strides = array<i32>} : memref<1x128xf32, #tpu.memory_space<vmem>>, vector<1x128xf32>,
    %c0_13 = arith.constant 0 : index
    %c0_14 = arith.constant 0 : index
    %29 = vector.load %arg6[%c0_13, %c0_14] : memref<1x128xf32, #tpu.memory_space<vmem>>, vector<1x128xf32>
    tpu.vector_store %arg6[%c0_13, %c0_14], %17 {strides = array<i32>} : memref<1x128xf32, #tpu.memory_space<vmem>>, vector<1x128xf32>,
    %c0_i32_15 = arith.constant 0 : i32
    %30 = arith.cmpi eq, %arg1, %c0_i32_15 : i32
    %31 = arith.extui %30 : i1 to i32
    %c0_i32_16 = arith.constant 0 : i32
    %32 = arith.cmpi ne, %31, %c0_i32_16 : i32
    scf.if %32 {
      %c0_17 = arith.constant 0 : index
      %c0_18 = arith.constant 0 : index
      %33 = vector.load %arg2[%c0_17, %c0_18] : memref<128x32xf32, #tpu.memory_space<vmem>>, vector<128x32xf32>
      %c0_19 = arith.constant 0 : index
      %c0_20 = arith.constant 0 : index
      %34 = vector.load %arg3[%c0_19, %c0_20] : memref<128x32xf32, #tpu.memory_space<vmem>>, vector<128x32xf32>
      %35 = arith.mulf %33, %34 : vector<128x32xf32>
      %cst_21 = arith.constant 1.000000e+00 : f32
      %36 = vector.broadcast %cst_21 : f32 to vector<1x32xf32>
      %cst_22 = arith.constant dense<0.000000e+00> : vector<1x128xf32>
      %37 = tpu.matmul %36, %35, %cst_22 {dimension_numbers = #tpu.dot_dimension_numbers<[1], [1], [0], [0], [0, 0, 1, 0], [], []>, precision = #tpu.contract_precision<fp32>} : vector<1x32xf32>, vector<128x32xf32>, vector<1x128xf32> -> vector<1x128xf32>
      %c0_23 = arith.constant 0 : index
      %c0_24 = arith.constant 0 : index
      %38 = vector.load %arg6[%c0_23, %c0_24] : memref<1x128xf32, #tpu.memory_space<vmem>>, vector<1x128xf32>
      %c0_25 = arith.constant 0 : index
      %c0_26 = arith.constant 0 : index
      %39 = vector.load %arg7[%c0_25, %c0_26] : memref<1x128xf32, #tpu.memory_space<vmem>>, vector<1x128xf32>
      %40 = math.log %39 : vector<1x128xf32>
      %41 = arith.addf %38, %40 : vector<1x128xf32>
      %42 = arith.subf %41, %37 : vector<1x128xf32>
      %c0_27 = arith.constant 0 : index
      %c0_28 = arith.constant 0 : index
      %43 = vector.load %arg5[%c0_27, %c0_28] : memref<1x128xf32, #tpu.memory_space<vmem>>, vector<1x128xf32>
      tpu.vector_store %arg5[%c0_27, %c0_28], %42 {strides = array<i32>} : memref<1x128xf32, #tpu.memory_space<vmem>>, vector<1x128xf32>,
    } else {
    }
    return
  }
  func.func @transform_0(%arg0: i32, %arg1: i32) -> (i32, i32) {
    %c0_i32 = arith.constant 0 : i32
    %c0_i32_0 = arith.constant 0 : i32
    return %arg0, %c0_i32 : i32, i32
  }
  func.func @transform_1(%arg0: i32, %arg1: i32) -> (i32, i32) {
    %c0_i32 = arith.constant 0 : i32
    %c0_i32_0 = arith.constant 0 : i32
    return %arg0, %c0_i32 : i32, i32
  }
  func.func @transform_2(%arg0: i32, %arg1: i32) -> (i32, i32) {
    %c0_i32 = arith.constant 0 : i32
    %c0_i32_0 = arith.constant 0 : i32
    return %arg1, %c0_i32 : i32, i32
  }
  func.func @transform_3(%arg0: i32, %arg1: i32) -> (i32, i32) {
    %c0_i32 = arith.constant 0 : i32
    %c0_i32_0 = arith.constant 0 : i32
    return %c0_i32, %arg0 : i32, i32
  }
}

</mosaic_0001>

<bundles_post_ra>
// kernel: tpu_custom_call.1
= control target key start
LH: loop header
LB: loop body
LE: loop exit
PB: predicated region body
PF: predicated region fallthrough
CT: control target
= control target key end

     0   :  { %vm69_vm0 = vcmask 261120   ;;  %v6349_v5 = vmov 0.0|0.0   ;;  %v6339_v10 = vmov 0.0   ;;  %vm4751_vm1 = vmmov 0   ;;  %s6332_s0 = inlined_call_operand.vmem [shape: f32[128,32], index: 0, kind: input, shape index: {}]   ;;  %s6333_s1 = inlined_call_operand.vmem [shape: f32[128,32], index: 1, kind: input, shape index: {}]   ;;  %s6334_s2 = inlined_call_operand.vmem [shape: f32[256,32], index: 2, kind: input, shape index: {}]   ;;  %s6335_s3 = inlined_call_operand.hbm [shape: f32[1,128], index: 3, kind: output, shape index: {}]  }
   0x1   :  { %v21_v0 = vld [vmem:[%s6332_s0] sm:$0xff]  ;;  %v22_v1 = vld [vmem:[%s6332_s0 + $0x8] sm:$0xff]  ;;  %4544 = vmatprep.subr.bf16.mxu1 %v6349_v5  ;;  %v23_v8 = vld [vmem:[%s6332_s0 + $0x10] sm:$0xff]  ;;  %20 = vst [vmem:[#allocation3] sm:$0x1] %v6339_v10  ;;  %4174 = vmatprep.mubr.msk.f32.mxu1 %vm4751_vm1, %v6339_v10 }
   0x2   :  { %v2524_v2 = vld [vmem:[%s6333_s1] sm:$0xff]  ;;  %v4786_v3 = vsel %vm69_vm0, %v21_v0, 0  ;;  %v4789_v4 = vsel %vm69_vm0, %v22_v1, 0  ;;  %v2525_v6 = vld [vmem:[%s6333_s1 + $0x8] sm:$0xff]  ;;  %v24_v9 = vld [vmem:[%s6332_s0 + $0x18] sm:$0xff]  ;;  %v4805_v14 = vsel %vm69_vm0, %v23_v8, 0 }
   0x3   :  { %v2540_v7 = vmul.f32 %v2524_v2, %v21_v0  ;;  %v215_v11 = vand.u32 4294901760, %v4786_v3  ;;  %v218_v12 = vand.u32 4294901760, %v4789_v4  ;;  %v2541_v13 = vmul.f32 %v2525_v6, %v22_v1  ;;  %v2526_v15 = vld [vmem:[%s6333_s1 + $0x10] sm:$0xff]  ;;  %v2527_v16 = vld [vmem:[%s6333_s1 + $0x18] sm:$0xff]  ;;  %v25_v17 = vld [vmem:[%s6332_s0 + $0x20] sm:$0xff] }
   0x4   :  { %v4822_v19 = vsel %vm69_vm0, %v24_v9, 0  ;;  %v6348_v20 = vand.u32 4294901760, %v4805_v14  ;;  %v2542_v21 = vmul.f32 %v2526_v15, %v23_v8  ;;  %v26_v22 = vld [vmem:[%s6332_s0 + $0x28] sm:$0xff]  ;;  %v2543_v28 = vmul.f32 %v2527_v16, %v24_v9  ;;  %v2528_v30 = vld [vmem:[%s6333_s1 + $0x20] sm:$0xff]  ;;  %v27_v40 = vld [vmem:[%s6332_s0 + $0x30] sm:$0xff] }
   0x5   :  { %v4819_v18 = vsel %vm69_vm0, %v2540_v7, 0  ;;  %v4832_v23 = vpack.c.bf16 %v218_v12, %v215_v11  ;;  %v4835_v24 = vsel %vm69_vm0, %v2541_v13, 0  ;;  %v6346_v26 = vand.u32 4294901760, %v4822_v19  ;;  %v2529_v34 = vld [vmem:[%s6333_s1 + $0x28] sm:$0xff]  ;;  %v28_v41 = vld [vmem:[%s6332_s0 + $0x38] sm:$0xff]  ;;  %v2530_v45 = vld [vmem:[%s6333_s1 + $0x30] sm:$0xff] }
   0x6   :  { %v2608_v25 = vand.u32 4294901760, %v4819_v18  ;;  %v2611_v27 = vand.u32 4294901760, %v4835_v24  ;;  %v4841_v29 = vsel %vm69_vm0, %v25_v17, 0  ;;  %v4854_v32 = vsel %vm69_vm0, %v2542_v21, 0  ;;  %v2531_v46 = vld [vmem:[%s6333_s1 + $0x38] sm:$0xff]  ;;  %v29_v55 = vld [vmem:[%s6332_s0 + $0x40] sm:$0xff] }
   0x7   :  { %6540 = vst [vmem:[#allocation7_spill] sm:$0xff] %v4832_v23  ;;  %4353 = vmatprep.subr.bf16.mxu0 %v4832_v23  ;;  %v4851_v31 = vpack.c.bf16 %v6346_v26, %v6348_v20  ;;  %v4857_v33 = vsel %vm69_vm0, %v26_v22, 0  ;;  %v2569_v36 = vsel %vm69_vm0, %v2543_v28, 0  ;;  %v6345_v37 = vand.u32 4294901760, %v4841_v29  ;;  %v30_v56 = vld [vmem:[%s6332_s0 + $0x48] sm:$0xff]  ;;  %v2532_v57 = vld [vmem:[%s6333_s1 + $0x40] sm:$0xff] }
   0x8   :  { %4355 = vmatpush3.bf16.xpose.msra.mxu0 %v4832_v23  ;;  %v4867_v35 = vpack.c.bf16 %v2611_v27, %v2608_v25  ;;  %v6344_v38 = vand.u32 4294901760, %v4857_v33  ;;  %v2544_v39 = vmul.f32 %v2528_v30, %v25_v17  ;;  %v2614_v42 = vand.u32 4294901760, %v4854_v32  ;;  %v2533_v58 = vld [vmem:[%s6333_s1 + $0x48] sm:$0xff]  ;;  %v31_v7 = vld [vmem:[%s6332_s0 + $0x50] sm:$0xff]  ;;  %v32_v8 = vld [vmem:[%s6332_s0 + $0x58] sm:$0xff] }
   0x9   :  { %6541 = vst [vmem:[#allocation8_spill] sm:$0xff] %v4851_v31  ;;  %4357 = vmatprep.subr.bf16.mxu0 %v4851_v31  ;;  %v2617_v43 = vand.u32 4294901760, %v2569_v36  ;;  %v2545_v44 = vmul.f32 %v2529_v34, %v26_v22  ;;  %v4889_v47 = vsel %vm69_vm0, %v27_v40, 0  ;;  %v4892_v48 = vsel %vm69_vm0, %v28_v41, 0  ;;  %v2534_v9 = vld [vmem:[%s6333_s1 + $0x50] sm:$0xff]  ;;  %v2535_v15 = vld [vmem:[%s6333_s1 + $0x58] sm:$0xff] }
   0xa   :  { %6542 = vst [vmem:[#allocation9_spill] sm:$0xff] %v4867_v35  ;;  %4546 = vmatpush3.bf16.xpose.msra.mxu1 %v4867_v35  ;;  %v4898_v49 = vpack.c.bf16 %v6344_v38, %v6345_v37  ;;  %v2572_v50 = vsel %vm69_vm0, %v2544_v39, 0  ;;  %v2546_v52 = vmul.f32 %v2530_v45, %v27_v40  ;;  %v2547_v54 = vmul.f32 %v2531_v46, %v28_v41 }
   0xb   :  { %4547 = vmatprep.subr.bf16.mxu1 %v6349_v5  ;;  %v2575_v51 = vsel %vm69_vm0, %v2545_v44, 0  ;;  %v4902_v53 = vpack.c.bf16 %v2617_v43, %v2614_v42  ;;  %v2620_v59 = vand.u32 4294901760, %v2572_v50  ;;  %v6343_v61 = vand.u32 4294901760, %v4889_v47 }
   0xc   :  { %6543 = vst [vmem:[#allocation10_spill] sm:$0xff] %v4898_v49  ;;  %v2623_v60 = vand.u32 4294901760, %v2575_v51  ;;  %v6342_v62 = vand.u32 4294901760, %v4892_v48  ;;  %v2578_v63 = vsel %vm69_vm0, %v2546_v52, 0  ;;  %v4922_v0 = vsel %vm69_vm0, %v29_v55, 0 }
   0xd   :  { %6544 = vst [vmem:[#allocation11_spill] sm:$0xff] %v4902_v53  ;;  %v2581_v1 = vsel %vm69_vm0, %v2547_v54, 0  ;;  %v2548_v2 = vmul.f32 %v2532_v57, %v29_v55  ;;  %v2549_v6 = vmul.f32 %v2533_v58, %v30_v56  ;;  %v4937_v13 = vsel %vm69_vm0, %v30_v56, 0 }
   0xe   :  { %v4942_v16 = vpack.c.bf16 %v2623_v60, %v2620_v59  ;;  %v4948_v17 = vpack.c.bf16 %v6342_v62, %v6343_v61  ;;  %v2626_v21 = vand.u32 4294901760, %v2578_v63  ;;  %v6341_v22 = vand.u32 4294901760, %v4922_v0 }
   0xf   :  { %v2629_v28 = vand.u32 4294901760, %v2581_v1  ;;  %v4952_v30 = vsel %vm69_vm0, %v31_v7, 0  ;;  %v4955_v34 = vsel %vm69_vm0, %v32_v8, 0  ;;  %v2550_v39 = vmul.f32 %v2534_v9, %v31_v7 }
  0x10   :  { %4359 = vmatpush3.bf16.xpose.msra.mxu0 %v4851_v31  ;;  %6545 = vst [vmem:[#allocation12_spill] sm:$0xff] %v4942_v16  ;;  %6546 = vst [vmem:[#allocation13_spill] sm:$0xff] %v4948_v17  ;;  %v6338_v40 = vand.u32 4294901760, %v4937_v13  ;;  %v2584_v41 = vsel %vm69_vm0, %v2548_v2, 0  ;;  %v2587_v44 = vsel %vm69_vm0, %v2549_v6, 0  ;;  %v2551_v45 = vmul.f32 %v2535_v15, %v32_v8 }
  0x11   :  { %4361 = vmatprep.subr.bf16.mxu0 %v4898_v49  ;;  %v4963_v46 = vsub.f32 %v4819_v18, %v2608_v25  ;;  %v4968_v52 = vsub.f32 %v4835_v24, %v2611_v27  ;;  %v4971_v54 = vsub.f32 %v4854_v32, %v2614_v42  ;;  %v4973_v55 = vsub.f32 %v2569_v36, %v2617_v43 }
  0x12   :  { %4549 = vmatpush3.bf16.xpose.msra.mxu1 %v4902_v53 }
  0x13   :  { %4550 = vmatprep.subr.bf16.mxu1 %v6349_v5  ;;  %6547 = vst [vmem:[#allocation14_spill] sm:$0xff] %v4963_v46  ;;  %6548 = vst [vmem:[#allocation15_spill] sm:$0xff] %v4968_v52 }
  0x14   :  { %6549 = vst [vmem:[#allocation16_spill] sm:$0xff] %v4971_v54  ;;  %6550 = vst [vmem:[#allocation17_spill] sm:$0xff] %v4973_v55 }
  0x15   :  { %8 = vsyncpa [#allocation5], 0  ;;  %v4976_v56 = vsub.f32 %v2572_v50, %v2620_v59  ;;  %v4978_v57 = vsub.f32 %v2575_v51, %v2623_v60  ;;  %v6337_v18 = vand.u32 4294901760, %v4952_v30  ;;  %v6336_v25 = vand.u32 4294901760, %v4955_v34  ;;  %v33_v24 = vld [vmem:[%s6332_s0 + $0x60] sm:$0xff]  ;;  %v34_v51 = vld [vmem:[%s6332_s0 + $0x68] sm:$0xff] }
  0x16   :  { %v2536_v27 = vld [vmem:[%s6333_s1 + $0x60] sm:$0xff]  ;;  %v4992_v36 = vsub.f32 %v2578_v63, %v2626_v21  ;;  %v2632_v42 = vand.u32 4294901760, %v2584_v41  ;;  %v2635_v43 = vand.u32 4294901760, %v2587_v44  ;;  %v2590_v50 = vsel %vm69_vm0, %v2550_v39, 0  ;;  %v38_v2 = vld [vmem:[%s6334_s2 + $0x8] sm:$0xff]  ;;  %v35_v39 = vld [vmem:[%s6332_s0 + $0x70] sm:$0xff] }
  0x17   :  { %v37_v32 = vld [vmem:[%s6334_s2] sm:$0xff]  ;;  %v4999_v58 = vpack.c.bf16 %v2629_v28, %v2626_v21  ;;  %v5001_v59 = vsub.f32 %v2581_v1, %v2629_v28  ;;  %v5007_v60 = vpack.c.bf16 %v6338_v40, %v6341_v22  ;;  %v2593_v63 = vsel %vm69_vm0, %v2551_v45, 0  ;;  %v2537_v1 = vld [vmem:[%s6333_s1 + $0x68] sm:$0xff]  ;;  %v2538_v45 = vld [vmem:[%s6333_s1 + $0x70] sm:$0xff] }
  0x18   :  { %4363 = vmatpush3.bf16.xpose.msra.mxu0 %v4898_v49  ;;  %v5014_v6 = vsub.f32 %v2584_v41, %v2632_v42  ;;  %v5017_v7 = vsel %vm69_vm0, %v33_v24, 0  ;;  %v2552_v8 = vmul.f32 %v2536_v27, %v33_v24  ;;  %v71_v9 = vsel %vm69_vm0, %v37_v32, 0  ;;  %v36_v41 = vld [vmem:[%s6332_s0 + $0x78] sm:$0xff] }
  0x19   :  { %4365 = vmatprep.subr.bf16.mxu0 %v4948_v17  ;;  %6551 = vst [vmem:[#allocation18_spill] sm:$0xff] %v4999_v58  ;;  %6552 = vst [vmem:[#allocation19_spill] sm:$0xff] %v5007_v60  ;;  %v5027_v15 = vpack.c.bf16 %v6336_v25, %v6337_v18  ;;  %v2638_v21 = vand.u32 4294901760, %v2590_v50  ;;  %v5030_v28 = vsel %vm69_vm0, %v34_v51, 0  ;;  %v5041_v24 = vand.u32 4294901760, %v71_v9  ;;  %v2539_v18 = vld [vmem:[%s6333_s1 + $0x78] sm:$0xff] }
  0x1a   :  { %4552 = vmatpush3.bf16.xpose.msra.mxu1 %v4942_v16  ;;  %v5043_v27 = vpack.c.bf16 %v2635_v43, %v2632_v42  ;;  %v5045_v32 = vsub.f32 %v2587_v44, %v2635_v43  ;;  %v2641_v25 = vand.u32 4294901760, %v2593_v63  ;;  %v74_v40 = vsel %vm69_vm0, %v38_v2, 0 }
  0x1b   :  { %4553 = vmatprep.subr.bf16.mxu1 %v6349_v5  ;;  %6553 = vst [vmem:[#allocation20_spill] sm:$0xff] %v5027_v15  ;;  %6554 = vst [vmem:[#allocation21_spill] sm:$0xff] %v5041_v24  ;;  %v5051_v10 = vsub.f32 %v2590_v50, %v2638_v21  ;;  %v6361_v22 = vand.u32 4294901760, %v5017_v7  ;;  %v2553_v62 = vmul.f32 %v2537_v1, %v34_v51  ;;  %v2596_v42 = vsel %vm69_vm0, %v2552_v8, 0  ;;  %v39_v51 = vld [vmem:[%s6334_s2 + $0x10] sm:$0xff] }
  0x1c   :  { %6555 = vst [vmem:[#allocation22_spill] sm:$0xff] %v5043_v27  ;;  %v5055_v61 = vsub.f32 %v71_v9, %v5041_v24  ;;  %v5059_v44 = vsel %vm69_vm0, %v35_v39, 0  ;;  %v5062_v43 = vsel %vm69_vm0, %v36_v41, 0  ;;  %v2554_v38 = vmul.f32 %v2538_v45, %v35_v39 }
  0x1d   :  { %v2555_v2 = vmul.f32 %v2539_v18, %v36_v41  ;;  %v5066_v37 = vand.u32 4294901760, %v74_v40  ;;  %v5072_v1 = vpack.c.bf16 %v2641_v25, %v2638_v21  ;;  %v5078_v9 = vsub.f32 %v4786_v3, %v215_v11  ;;  %v40_v3 = vld [vmem:[%s6334_s2 + $0x18] sm:$0xff] }
  0x1e   :  { %6556 = vst [vmem:[#allocation23_spill] sm:$0xff] %v5055_v61  ;;  %v6347_v50 = vand.u32 4294901760, %v5055_v61  ;;  %v5083_v18 = vsub.f32 %v4789_v4, %v218_v12  ;;  %v5086_v39 = vsub.f32 %v2593_v63, %v2641_v25  ;;  %v2599_v41 = vsel %vm69_vm0, %v2553_v62, 0 }
  0x1f   :  { %6557 = vst [vmem:[#allocation24_spill] sm:$0xff] %v5066_v37  ;;  %6558 = vst [vmem:[#allocation25_spill] sm:$0xff] %v5072_v1  ;;  %v2644_v21 = vand.u32 4294901760, %v2596_v42  ;;  %v4752_v12 = vmov 0   ;;  %v77_v62 = vsel %vm69_vm0, %v39_v51, 0  ;;  %v2602_v63 = vsel %vm69_vm0, %v2554_v38, 0 }
  0x20   :  { %4367 = vmatpush3.bf16.xpose.msra.mxu0 %v4948_v17  ;;  %6559 = vst [vmem:[#allocation26_spill] sm:$0xff] %v5083_v18  ;;  %v298_v45 = vsub.f32 %v5055_v61, %v6347_v50  ;;  %v2557_v25 = vsel %vm69_vm0, 1.0, %v4752_v12  ;;  %v2605_v26 = vsel %vm69_vm0, %v2555_v2, 0  ;;  %v5103_v20 = vsub.f32 %v74_v40, %v5066_v37  ;;  %v41_v51 = vld [vmem:[%s6334_s2 + $0x20] sm:$0xff] }
  0x21   :  { %4369 = vmatprep.subr.bf16.mxu0 %v5007_v60  ;;  %v5107_v4 = vand.u32 4294901760, %v77_v62  ;;  %v80_v11 = vsel %vm69_vm0, %v40_v3, 0  ;;  %v2647_v12 = vand.u32 4294901760, %v2599_v41  ;;  %v5113_v38 = vsub.f32 %v2557_v25, %v2557_v25 }
  0x22   :  { %4555 = vmatpush3.bf16.xpose.msra.mxu1 %v4999_v58  ;;  %v299_v50 = vand.u32 4294901760, %v298_v45  ;;  %6560 = vst [vmem:[#allocation27_spill] sm:$0xff] %v5103_v20  ;;  %v5116_v40 = vand.u32 4294901760, %v80_v11  ;;  %v42_v45 = vld [vmem:[%s6334_s2 + $0x28] sm:$0xff]  ;;  %v6564_v3 = vand.u32 4294901760, %v5030_v28  ;;  %v5127_v8 = vsub.f32 %v2596_v42, %v2644_v21 }
  0x23   :  { %4556 = vmatprep.subr.bf16.mxu1 %v6349_v5  ;;  %6561 = vst [vmem:[#allocation28_spill] sm:$0xff] %v5107_v4  ;;  %6562 = vst [vmem:[#allocation29_spill] sm:$0xff] %v5113_v38  ;;  %v2650_v58 = vand.u32 4294901760, %v2602_v63  ;;  %v6567_v25 = vand.u32 4294901760, %v5059_v44  ;;  %v6568_v2 = vand.u32 4294901760, %v5062_v43  ;;  %v83_v49 = vsel %vm69_vm0, %v41_v51, 0 }
  0x24   :  { %3694 = vmatprep.mubr.f32.mxu0 %v299_v50  ;;  %6563 = vst [vmem:[#allocation30_spill] sm:$0xff] %v5116_v40  ;;  %v5125_v5 = vpack.c.bf16 %v6564_v3, %v6361_v22  ;;  %6566 = vst [vmem:[#allocation32_spill] sm:$0xff] %v5127_v8  ;;  %v2653_v50 = vand.u32 4294901760, %v2605_v26  ;;  %v6570_v42 = vand.u32 4294901760, %v5078_v9  ;;  %v6571_v22 = vand.u32 4294901760, %v5083_v18 }
  0x25   :  { %v5134_v16 = vpack.c.bf16 %v6568_v2, %v6567_v25  ;;  %v5147_v35 = vsub.f32 %v77_v62, %v5107_v4  ;;  %v86_v2 = vsel %vm69_vm0, %v42_v45, 0  ;;  %v5151_v25 = vpack.c.bf16 %v2647_v12, %v2644_v21  ;;  %v46_v4 = vld [vmem:[%s6334_s2 + $0x48] sm:$0xff] }
  0x26   :  { %6565 = vst [vmem:[#allocation31_spill] sm:$0xff] %v5125_v5  ;;  %v619_v3 = vsub.f32 %v5078_v9, %v6570_v42  ;;  %v6574_v53 = vand.u32 4294901760, %v4963_v46  ;;  %v5158_v42 = vsub.f32 %v80_v11, %v5116_v40  ;;  %v6576_v31 = vmov 0.0|0.0  }
  0x27   :  { %6569 = vst [vmem:[#allocation33_spill] sm:$0xff] %v5134_v16  ;;  %6572 = vst [vmem:[#allocation34_spill] sm:$0xff] %v5147_v35  ;;  %v5163_v62 = vpack.c.bf16 %v2653_v50, %v2650_v58  ;;  %v5165_v45 = vsub.f32 %v2602_v63, %v2650_v58  ;;  %v5169_v21 = vsub.f32 %v2605_v26, %v2653_v50  ;;  %v6582_v51 = vand.u32 4294901760, %v5103_v20  ;;  %v43_v58 = vld [vmem:[%s6334_s2 + $0x30] sm:$0xff] }
  0x28   :  { %4371 = vmatpush3.bf16.xpose.msra.mxu0 %v5007_v60  ;;  %v626_v60 = vsub.f32 %v5083_v18, %v6571_v22  ;;  %6573 = vst [vmem:[#allocation35_spill] sm:$0xff] %v5151_v25  ;;  %v2702_v17 = vsub.f32 %v4963_v46, %v6574_v53  ;;  %6575 = vst [vmem:[#allocation36_spill] sm:$0xff] %v5158_v42  ;;  %v5161_v22 = vsub.f32 %v2599_v41, %v2647_v12 }
  0x29   :  { %4373 = vmatprep.subr.bf16.mxu0 %v5027_v15  ;;  %6578 = vst [vmem:[#allocation38_spill] sm:$0xff] %v5163_v62  ;;  %6579 = vst [vmem:[#allocation39_spill] sm:$0xff] %v5165_v45  ;;  %v5174_v61 = vsub.f32 %v5103_v20, %v6582_v51  ;;  %v5176_v53 = vand.u32 4294901760, %v86_v2  ;;  %v6584_v11 = vand.u32 4294901760, %v4805_v14  ;;  %v620_v63 = vand.u32 4294901760, %v619_v3  ;;  %v44_v20 = vld [vmem:[%s6334_s2 + $0x38] sm:$0xff] }
  0x2a   :  { %4558 = vmatpush3.bf16.xpose.msra.mxu1 %v5043_v27  ;;  %6577 = vst [vmem:[#allocation37_spill] sm:$0xff] %v5161_v22  ;;  %v5167_v27 = vand.u32 4294901760, %v83_v49  ;;  %6581 = vst [vmem:[#allocation41_spill] sm:$0xff] %v5169_v21  ;;  %v627_v12 = vand.u32 4294901760, %v626_v60  ;;  %v6586_v26 = vand.u32 4294901760, %v4968_v52  ;;  %v6587_v23 = vand.u32 4294901760, %v5113_v38 }
  0x2b   :  { %4559 = vmatprep.subr.bf16.mxu1 %v6576_v31  ;;  %6583 = vst [vmem:[#allocation42_spill] sm:$0xff] %v5176_v53  ;;  %v5181_v41 = vsub.f32 %v4805_v14, %v6584_v11  ;;  %v2703_v11 = vand.u32 4294901760, %v2702_v17  ;;  %v6588_v60 = vand.u32 4294901760, %v4822_v19  ;;  %v89_v37 = vsel %vm69_vm0, %v43_v58, 0 }
  0x2c   :  { %6580 = vst [vmem:[#allocation40_spill] sm:$0xff] %v5167_v27  ;;  %v2709_v50 = vsub.f32 %v4968_v52, %v6586_v26  ;;  %v5196_v14 = vsub.f32 %v5113_v38, %v6587_v23  ;;  %v5205_v26 = vsub.f32 %v83_v49, %v5167_v27  ;;  %v45_v23 = vld [vmem:[%s6334_s2 + $0x40] sm:$0xff]  ;;  %v5215_v17 = vsub.f32 %v86_v2, %v5176_v53 }
  0x2d   :  { %6585 = vst [vmem:[#allocation43_spill] sm:$0xff] %v5181_v41  ;;  %v5202_v3 = vsub.f32 %v4822_v19, %v6588_v60  ;;  %v5218_v60 = vand.u32 4294901760, %v89_v37  ;;  %v92_v49 = vsel %vm69_vm0, %v44_v20, 0  ;;  %v5226_v51 = vpack.c.bf16 %v627_v12, %v620_v63 }
  0x2e   :  { %6590 = vst [vmem:[#allocation45_spill] sm:$0xff] %v5205_v26  ;;  %6591 = vst [vmem:[#allocation46_spill] sm:$0xff] %v5215_v17  ;;  %v2710_v40 = vand.u32 4294901760, %v2709_v50  ;;  %v6593_v2 = vand.u32 4294901760, %v5147_v35  ;;  %v6594_v20 = vand.u32 4294901760, %v5158_v42  ;;  %v5240_v53 = vand.u32 4294901760, %v92_v49 }
  0x2f   :  { %6589 = vst [vmem:[#allocation44_spill] sm:$0xff] %v5202_v3  ;;  %6592 = vst [vmem:[#allocation47_spill] sm:$0xff] %v5218_v60  ;;  %v95_v63 = vsel %vm69_vm0, %v45_v23, 0  ;;  %v6596_v50 = vand.u32 4294901760, %v4971_v54  ;;  %v6597_v58 = vand.u32 4294901760, %v4973_v55  ;;  %v6598_v23 = vand.u32 4294901760, %v5181_v41 }
  0x30   :  { %4375 = vmatpush3.bf16.xpose.msra.mxu0 %v5027_v15  ;;  %v5231_v15 = vsub.f32 %v5147_v35, %v6593_v2  ;;  %v5237_v19 = vsub.f32 %v5158_v42, %v6594_v20  ;;  %6595 = vst [vmem:[#allocation48_spill] sm:$0xff] %v5240_v53  ;;  %v98_v20 = vsel %vm69_vm0, %v46_v4, 0  ;;  %v5258_v12 = vsub.f32 %v89_v37, %v5218_v60 }
  0x31   :  { %4377 = vmatprep.subr.bf16.mxu0 %v5125_v5  ;;  %v2716_v2 = vsub.f32 %v4971_v54, %v6596_v50  ;;  %v633_v35 = vsub.f32 %v5181_v41, %v6598_v23  ;;  %v5260_v27 = vpack.c.bf16 %v2710_v40, %v2703_v11  ;;  %v5263_v54 = vand.u32 4294901760, %v95_v63  ;;  %v47_v11 = vld [vmem:[%s6334_s2 + $0x50] sm:$0xff] }
  0x32   :  { %4561 = vmatpush3.bf16.xpose.msra.mxu1 %v5072_v1  ;;  %v2723_v1 = vsub.f32 %v4973_v55, %v6597_v58  ;;  %6599 = vst [vmem:[#allocation49_spill] sm:$0xff] %v5258_v12  ;;  %v6601_v58 = vand.u32 4294901760, %v4841_v29  ;;  %v6602_v42 = vand.u32 4294901760, %v5202_v3  ;;  %v5275_v37 = vsub.f32 %v92_v49, %v5240_v53  ;;  %v48_v49 = vld [vmem:[%s6334_s2 + $0x58] sm:$0xff] }
  0x33   :  { %4562 = vmatprep.subr.bf16.mxu1 %v6576_v31  ;;  %6600 = vst [vmem:[#allocation50_spill] sm:$0xff] %v5263_v54  ;;  %v5277_v40 = vand.u32 4294901760, %v98_v20  ;;  %v6605_v50 = vand.u32 4294901760, %v5205_v26  ;;  %v6606_v60 = vand.u32 4294901760, %v4857_v33  ;;  %v6607_v53 = vand.u32 4294901760, %v5215_v17 }
  0x34   :  { %v5268_v4 = vsub.f32 %v4841_v29, %v6601_v58  ;;  %v640_v23 = vsub.f32 %v5202_v3, %v6602_v42  ;;  %6603 = vst [vmem:[#allocation51_spill] sm:$0xff] %v5275_v37  ;;  %v2717_v58 = vand.u32 4294901760, %v2716_v2  ;;  %v2724_v38 = vand.u32 4294901760, %v2723_v1 }
  0x35   :  { %6604 = vst [vmem:[#allocation52_spill] sm:$0xff] %v5277_v40  ;;  %v5285_v29 = vsub.f32 %v5205_v26, %v6605_v50  ;;  %v5290_v42 = vsub.f32 %v4857_v33, %v6606_v60  ;;  %v5299_v55 = vsub.f32 %v5215_v17, %v6607_v53  ;;  %v634_v50 = vand.u32 4294901760, %v633_v35  ;;  %v49_v53 = vld [vmem:[%s6334_s2 + $0x60] sm:$0xff]  ;;  %v50_v35 = vld [vmem:[%s6334_s2 + $0x68] sm:$0xff] }
  0x36   :  { %v5305_v33 = vsub.f32 %v95_v63, %v5263_v54  ;;  %v5316_v1 = vsub.f32 %v98_v20, %v5277_v40  ;;  %v104_v63 = vsel %vm69_vm0, %v48_v49, 0  ;;  %v5323_v60 = vpack.c.bf16 %v2724_v38, %v2717_v58 }
  0x37   :  { %v6611_v20 = vand.u32 4294901760, %v5258_v12  ;;  %v6612_v49 = vand.u32 4294901760, %v4976_v56  ;;  %v5337_v54 = vand.u32 4294901760, %v104_v63  ;;  %v107_v38 = vsel %vm69_vm0, %v49_v53, 0 }
  0x38   :  { %4379 = vmatpush3.bf16.xpose.msra.mxu0 %v5125_v5  ;;  %6608 = vst [vmem:[#allocation53_spill] sm:$0xff] %v5305_v33  ;;  %v101_v5 = vsel %vm69_vm0, %v47_v11, 0  ;;  %6609 = vst [vmem:[#allocation54_spill] sm:$0xff] %v5316_v1  ;;  %v641_v11 = vand.u32 4294901760, %v640_v23  ;;  %v6614_v26 = vand.u32 4294901760, %v5268_v4  ;;  %v6615_v52 = vand.u32 4294901760, %v4978_v57 }
  0x39   :  { %4381 = vmatprep.subr.bf16.mxu0 %v5134_v16  ;;  %v5318_v2 = vand.u32 4294901760, %v101_v5  ;;  %v2730_v40 = vsub.f32 %v4976_v56, %v6612_v49  ;;  %6613 = vst [vmem:[#allocation56_spill] sm:$0xff] %v5337_v54  ;;  %v110_v23 = vsel %vm69_vm0, %v50_v35, 0  ;;  %v5363_v41 = vand.u32 4294901760, %v107_v38 }
  0x3a   :  { %4564 = vmatpush3.bf16.xpose.msra.mxu1 %v5151_v25  ;;  %v5332_v25 = vsub.f32 %v5258_v12, %v6611_v20  ;;  %v647_v17 = vsub.f32 %v5268_v4, %v6614_v26  ;;  %v2737_v20 = vsub.f32 %v4978_v57, %v6615_v52  ;;  %v6616_v12 = vand.u32 4294901760, %v5275_v37 }
  0x3b   :  { %6610 = vst [vmem:[#allocation55_spill] sm:$0xff] %v5318_v2  ;;  %4565 = vmatprep.subr.bf16.mxu1 %v6576_v31  ;;  %v5355_v53 = vsub.f32 %v101_v5, %v5318_v2  ;;  %v5358_v58 = vpack.c.bf16 %v641_v11, %v634_v50  ;;  %v6618_v26 = vand.u32 4294901760, %v5290_v42  ;;  %6619 = vst [vmem:[#allocation58_spill] sm:$0xff] %v5363_v41  ;;  %v6620_v52 = vand.u32 4294901760, %v4889_v47 }
  0x3c   :  { %v5351_v49 = vsub.f32 %v5275_v37, %v6616_v12  ;;  %v2731_v46 = vand.u32 4294901760, %v2730_v40  ;;  %v5373_v35 = vsub.f32 %v104_v63, %v5337_v54  ;;  %v6622_v50 = vand.u32 4294901760, %v4892_v48 }
  0x3d   :  { %6617 = vst [vmem:[#allocation57_spill] sm:$0xff] %v5355_v53  ;;  %v654_v3 = vsub.f32 %v5290_v42, %v6618_v26  ;;  %v5368_v12 = vsub.f32 %v4889_v47, %v6620_v52  ;;  %v51_v26 = vld [vmem:[%s6334_s2 + $0x70] sm:$0xff]  ;;  %v6623_v47 = vand.u32 4294901760, %v5305_v33  ;;  %v648_v40 = vand.u32 4294901760, %v647_v17 }
  0x3e   :  { %6621 = vst [vmem:[#allocation59_spill] sm:$0xff] %v5373_v35  ;;  %v5378_v11 = vsub.f32 %v4892_v48, %v6622_v50  ;;  %v2738_v5 = vand.u32 4294901760, %v2737_v20  ;;  %v5389_v63 = vand.u32 4294901760, %v110_v23  ;;  %v52_v48 = vld [vmem:[%s6334_s2 + $0x78] sm:$0xff]  ;;  %v5405_v20 = vsub.f32 %v107_v38, %v5363_v41  ;;  %v54_v38 = vld [vmem:[%s6334_s2 + $0x88] sm:$0xff] }
  0x3f   :  { %v5387_v52 = vsub.f32 %v5305_v33, %v6623_v47  ;;  %v113_v50 = vsel %vm69_vm0, %v51_v26, 0  ;;  %v116_v54 = vsel %vm69_vm0, %v52_v48, 0  ;;  %v655_v33 = vand.u32 4294901760, %v654_v3 }
  0x40   :  { %4383 = vmatpush3.bf16.xpose.msra.mxu0 %v5134_v16  ;;  %6624 = vst [vmem:[#allocation60_spill] sm:$0xff] %v5389_v63  ;;  %v6625_v16 = vand.u32 4294901760, %v5316_v1  ;;  %6626 = vst [vmem:[#allocation61_spill] sm:$0xff] %v5405_v20  ;;  %v5415_v17 = vand.u32 4294901760, %v113_v50  ;;  %v5422_v26 = vpack.c.bf16 %v2738_v5, %v2731_v46  ;;  %v5425_v41 = vsub.f32 %v110_v23, %v5389_v63 }
  0x41   :  { %4385 = vmatprep.subr.bf16.mxu0 %v5226_v51  ;;  %v6630_v2 = vand.u32 4294901760, %v4992_v36  ;;  %v5435_v24 = vand.u32 4294901760, %v116_v54  ;;  %v6632_v3 = vand.u32 4294901760, %v5174_v61  ;;  %v6633_v23 = vand.u32 4294901760, %v5368_v12 }
  0x42   :  { %4567 = vmatpush3.bf16.xpose.msra.mxu1 %v5163_v62  ;;  %v5399_v37 = vsub.f32 %v5316_v1, %v6625_v16  ;;  %v53_v16 = vld [vmem:[%s6334_s2 + $0x80] sm:$0xff]  ;;  %6627 = vst [vmem:[#allocation62_spill] sm:$0xff] %v5415_v17  ;;  %6628 = vst [vmem:[#allocation63_spill] sm:$0xff] %v5425_v41  ;;  %v6629_v1 = vand.u32 4294901760, %v5355_v53 }
  0x43   :  { %4568 = vmatprep.subr.bf16.mxu1 %v6576_v31  ;;  %v2744_v48 = vsub.f32 %v4992_v36, %v6630_v2  ;;  %6631 = vst [vmem:[#allocation64_spill] sm:$0xff] %v5435_v24  ;;  %v119_v18 = vsel %vm69_vm0, %v53_v16, 0  ;;  %v661_v5 = vsub.f32 %v5368_v12, %v6633_v23  ;;  %v6635_v2 = vand.u32 4294901760, %v5231_v15 }
  0x44   :  { %v5430_v47 = vsub.f32 %v5355_v53, %v6629_v1  ;;  %v6634_v1 = vand.u32 4294901760, %v5001_v59  ;;  %v122_v53 = vsel %vm69_vm0, %v54_v38, 0  ;;  %v6636_v16 = vand.u32 4294901760, %v5373_v35 }
  0x45   :  { %v6637_v23 = vand.u32 4294901760, %v5378_v11  ;;  %v6639_v38 = vand.u32 4294901760, %v5196_v14  ;;  %v5466_v15 = vpack.c.bf16 %v655_v33, %v648_v40  ;;  %v5479_v14 = vsub.f32 %v116_v54, %v5435_v24  ;;  %v55_v33 = vld [vmem:[%s6334_s2 + $0x90] sm:$0xff] }
  0x46   :  { %v2751_v62 = vsub.f32 %v5001_v59, %v6634_v1  ;;  %v5461_v1 = vsub.f32 %v113_v50, %v5415_v17  ;;  %v6644_v40 = vmov 0.0   ;;  %v662_v54 = vand.u32 4294901760, %v661_v5 }
  0x47   :  { %3695 = vmatmul.mubr.f32.vlgmr.msra.gmra.mrb[0].mxu0 %v6632_v3  ;;  %v5455_v3 = vsub.f32 %v5373_v35, %v6636_v16  ;;  %v668_v46 = vsub.f32 %v5378_v11, %v6637_v23  ;;  %v6641_v16 = vand.u32 4294901760, %v4922_v0  ;;  %v2745_v23 = vand.u32 4294901760, %v2744_v48  ;;  %6642 = vst [vmem:[#allocation67_spill] sm:$0xff] %v5479_v14  ;;  %v56_v35 = vld [vmem:[%s6334_s2 + $0x98] sm:$0xff] }
  0x48   :  { %4387 = vmatpush3.bf16.xpose.msra.mxu0 %v5226_v51  ;;  %3697 = vmatprep.mubr.f32.mxu0 %v6635_v2  ;;  %6638 = vst [vmem:[#allocation65_spill] sm:$0xff] %v5461_v1  ;;  %v5469_v2 = vand.u32 4294901760, %v119_v18  ;;  %v6647_v50 = vand.u32 4294901760, %v4937_v13 }
  0x49   :  { %4175 = vmatmul.mubr.f32.vlgmr.msra.gmra.mrb[0].mxu1 %v6639_v38  ;;  %4389 = vmatprep.subr.bf16.mxu0 %v5358_v58  ;;  %v5474_v61 = vsub.f32 %v4922_v0, %v6641_v16  ;;  %v5481_v38 = vand.u32 4294901760, %v122_v53  ;;  %v6645_v0 = vand.u32 4294901760, %v5237_v19  ;;  %v2752_v16 = vand.u32 4294901760, %v2751_v62  ;;  %v57_v62 = vld [vmem:[%s6334_s2 + $0xa0] sm:$0xff] }
  0x4a   :  { %6640 = vst [vmem:[#allocation66_spill] sm:$0xff] %v5469_v2  ;;  %4570 = vmatpush3.bf16.xpose.msra.mxu1 %v5260_v27  ;;  %4209 = vmatprep.mubr.msk.f32.mxu1 %vm4751_vm1, %v6644_v40  ;;  %v6646_v27 = vand.u32 4294901760, %v5405_v20  ;;  %v5499_v51 = vsub.f32 %v4937_v13, %v6647_v50  ;;  %v6648_v19 = vand.u32 4294901760, %v5285_v29  ;;  %v669_v24 = vand.u32 4294901760, %v668_v46 }
  0x4b   :  { %6643 = vst [vmem:[#allocation68_spill] sm:$0xff] %v5481_v38  ;;  %3698 = vmatmul.mubr.f32.gmra.mrb[2].mxu0 %v6645_v0  ;;  %4571 = vmatprep.subr.bf16.mxu1 %v6576_v31  ;;  %v5513_v13 = vsub.f32 %v119_v18, %v5469_v2  ;;  %v125_v29 = vsel %vm69_vm0, %v55_v33, 0  ;;  %v5525_v5 = vsub.f32 %v122_v53, %v5481_v38  ;;  %v6652_v18 = vand.u32 4294901760, %v5299_v55 }
  0x4c   :  { %v5494_v48 = vsub.f32 %v5405_v20, %v6646_v27  ;;  %3700 = vmatprep.mubr.f32.mxu0 %v6648_v19  ;;  %v6650_v19 = vand.u32 4294901760, %v5425_v41  ;;  %v128_v27 = vsel %vm69_vm0, %v56_v35, 0  ;;  %v5532_v33 = vand.u32 4294901760, %v125_v29 }
  0x4d   :  { %6649 = vst [vmem:[#allocation69_spill] sm:$0xff] %v5513_v13  ;;  %6651 = vst [vmem:[#allocation70_spill] sm:$0xff] %v5525_v5  ;;  %v131_v2 = vsel %vm69_vm0, %v57_v62, 0  ;;  %v6654_v53 = vand.u32 4294901760, %v5332_v25  ;;  %v5541_v35 = vpack.c.bf16 %v2752_v16, %v2745_v23  ;;  %v6655_v55 = vand.u32 4294901760, %v5461_v1 }
  0x4e   :  { %v5521_v46 = vsub.f32 %v5425_v41, %v6650_v19  ;;  %6653 = vst [vmem:[#allocation71_spill] sm:$0xff] %v5532_v33  ;;  %v58_v19 = vld [vmem:[%s6334_s2 + $0xa8] sm:$0xff]  ;;  %v6656_v50 = vand.u32 4294901760, %v5014_v6  ;;  %v5551_v20 = vand.u32 4294901760, %v128_v27  ;;  %v5554_v0 = vpack.c.bf16 %v669_v24, %v662_v54 }
  0x4f   :  { %3701 = vmatmul.mubr.f32.gmra.mrb[4].mxu0 %v6652_v18  ;;  %v5546_v18 = vsub.f32 %v5461_v1, %v6655_v55  ;;  %v6659_v16 = vand.u32 4294901760, %v5045_v32  ;;  %v5572_v54 = vand.u32 4294901760, %v131_v2  ;;  %v134_v25 = vsel %vm69_vm0, %v58_v19, 0 }
  0x50   :  { %4391 = vmatpush3.bf16.xpose.msra.mxu0 %v5358_v58  ;;  %3703 = vmatprep.mubr.f32.mxu0 %v6654_v53  ;;  %v2758_v62 = vsub.f32 %v5014_v6, %v6656_v50  ;;  %6657 = vst [vmem:[#allocation72_spill] sm:$0xff] %v5551_v20  ;;  %v6658_v58 = vand.u32 4294901760, %v5474_v61  ;;  %v6660_v50 = vand.u32 4294901760, %v5479_v14  ;;  %v6665_v24 = vand.u32 4294901760, %v4952_v30 }
  0x51   :  { %4393 = vmatprep.subr.bf16.mxu0 %v5466_v15  ;;  %v2765_v53 = vsub.f32 %v5045_v32, %v6659_v16  ;;  %6661 = vst [vmem:[#allocation73_spill] sm:$0xff] %v5572_v54  ;;  %v429_v16 = vand.u32 4294901760, %v5521_v46  ;;  %v6666_v19 = vand.u32 4294901760, %v5387_v52  ;;  %v5594_v46 = vsub.f32 %v128_v27, %v5551_v20  ;;  %v60_v27 = vld [vmem:[%s6334_s2 + $0xb8] sm:$0xff] }
  0x52   :  { %v5560_v23 = vsub.f32 %v5474_v61, %v6658_v58  ;;  %4573 = vmatpush3.bf16.xpose.msra.mxu1 %v5323_v60  ;;  %v5569_v55 = vsub.f32 %v5479_v14, %v6660_v50  ;;  %v6662_v58 = vand.u32 4294901760, %v5351_v49  ;;  %v6663_v60 = vand.u32 4294901760, %v5499_v51 }
  0x53   :  { %4574 = vmatprep.subr.bf16.mxu1 %v6576_v31  ;;  %v5583_v50 = vsub.f32 %v125_v29, %v5532_v33  ;;  %v5588_v14 = vsub.f32 %v4952_v30, %v6665_v24  ;;  %v439_v49 = vand.u32 4294901760, %v5546_v18  ;;  %6667 = vst [vmem:[#allocation75_spill] sm:$0xff] %v5594_v46  ;;  %v6668_v41 = vand.u32 4294901760, %v4955_v34  ;;  %v59_v29 = vld [vmem:[%s6334_s2 + $0xb0] sm:$0xff] }
  0x54   :  { %3704 = vmatmul.mubr.f32.gmra.mrb[6].mxu0 %v6662_v58  ;;  %v682_v1 = vsub.f32 %v5499_v51, %v6663_v60  ;;  %v2759_v58 = vand.u32 4294901760, %v2758_v62  ;;  %v6669_v30 = vand.u32 4294901760, %v5513_v13  ;;  %v676_v18 = vand.u32 4294901760, %v5560_v23  ;;  %v61_v23 = vld [vmem:[%s6334_s2 + $0xc0] sm:$0xff] }
  0x55   :  { %6664 = vst [vmem:[#allocation74_spill] sm:$0xff] %v5583_v50  ;;  %3706 = vmatprep.mubr.f32.mxu0 %v6666_v19  ;;  %v5599_v60 = vsub.f32 %v4955_v34, %v6668_v41  ;;  %v2766_v62 = vand.u32 4294901760, %v2765_v53  ;;  %v5610_v24 = vand.u32 4294901760, %v134_v25  ;;  %v6671_v41 = vand.u32 4294901760, %v5525_v5 }
  0x56   :  { %v5607_v52 = vsub.f32 %v5513_v13, %v6669_v30  ;;  %v5622_v20 = vsub.f32 %v131_v2, %v5572_v54  ;;  %v6673_v53 = vand.u32 4294901760, %v5399_v37  ;;  %v62_v2 = vld [vmem:[%s6334_s2 + $0xc8] sm:$0xff]  ;;  %v6674_v30 = vand.u32 4294901760, %v5430_v47 }
  0x57   :  { %6670 = vst [vmem:[#allocation76_spill] sm:$0xff] %v5610_v24  ;;  %v5619_v19 = vsub.f32 %v5525_v5, %v6671_v41  ;;  %v137_v41 = vsel %vm69_vm0, %v59_v29, 0  ;;  %v683_v5 = vand.u32 4294901760, %v682_v1  ;;  %v6476_v37 = vand.u32 4294901760, %v5594_v46 }
  0x58   :  { %6672 = vst [vmem:[#allocation77_spill] sm:$0xff] %v5622_v20  ;;  %3707 = vmatmul.mubr.f32.gmra.mrb[8].mxu0 %v6673_v53  ;;  %v140_v34 = vsel %vm69_vm0, %v60_v27, 0  ;;  %v459_v29 = vand.u32 4294901760, %v5607_v52  ;;  %v5645_v33 = vpack.c.bf16 %v2766_v62, %v2759_v58  ;;  %v5648_v13 = vsub.f32 %v134_v25, %v5610_v24 }
  0x59   :  { %4395 = vmatpush3.bf16.xpose.msra.mxu0 %v5466_v15  ;;  %3709 = vmatprep.mubr.f32.mxu0 %v6674_v30  ;;  %v143_v15 = vsel %vm69_vm0, %v61_v23, 0  ;;  %v6676_v1 = vand.u32 4294901760, %v5051_v10  ;;  %v5658_v27 = vand.u32 4294901760, %v137_v41  ;;  %v146_v52 = vsel %vm69_vm0, %v62_v2, 0 }
  0x5a   :  { %4397 = vmatprep.subr.bf16.mxu0 %v5554_v0  ;;  %6675 = vst [vmem:[#allocation78_spill] sm:$0xff] %v5648_v13  ;;  %4576 = vmatpush3.bf16.xpose.msra.mxu1 %v5422_v26  ;;  %v6678_v58 = vand.u32 4294901760, %v5455_v3  ;;  %v6679_v25 = vand.u32 4294901760, %v5583_v50  ;;  %v6680_v62 = vand.u32 4294901760, %v5588_v14  ;;  %v5675_v53 = vand.u32 4294901760, %v140_v34 }
  0x5b   :  { %v5656_v30 = vsub.f32 %v5051_v10, %v6676_v1  ;;  %6677 = vst [vmem:[#allocation79_spill] sm:$0xff] %v5658_v27  ;;  %4577 = vmatprep.subr.bf16.mxu1 %v6576_v31  ;;  %v6681_v1 = vand.u32 4294901760, %v5086_v39  ;;  %v6683_v3 = vand.u32 4294901760, %v5494_v48  ;;  %v469_v2 = vand.u32 4294901760, %v5619_v19 }
  0x5c   :  { %3710 = vmatmul.mubr.f32.gmra.mrb[10].mxu0 %v6678_v58  ;;  %v5667_v26 = vsub.f32 %v5583_v50, %v6679_v25  ;;  %v689_v23 = vsub.f32 %v5588_v14, %v6680_v62  ;;  %6682 = vst [vmem:[#allocation80_spill] sm:$0xff] %v5675_v53  ;;  %v5683_v58 = vsub.f32 %v5594_v46, %v6476_v37  ;;  %v6684_v25 = vand.u32 4294901760, %v5599_v60 }
  0x5d   :  { %v2779_v47 = vsub.f32 %v5086_v39, %v6681_v1  ;;  %3712 = vmatprep.mubr.f32.mxu0 %v6683_v3  ;;  %v5688_v50 = vand.u32 4294901760, %v143_v15  ;;  %v4400_v24 = vpack.c.bf16 %v683_v5, %v676_v18  ;;  %v5690_v1 = vand.u32 4294901760, %v146_v52 }
  0x5e   :  { %v696_v62 = vsub.f32 %v5599_v60, %v6684_v25  ;;  %v6687_v54 = vand.u32 4294901760, %v5017_v7  ;;  %v6689_v19 = vand.u32 4294901760, %v5030_v28  ;;  %v6691_v37 = vand.u32 4294901760, %v5622_v20 }
  0x5f   :  { %6685 = vst [vmem:[#allocation81_spill] sm:$0xff] %v5688_v50  ;;  %6686 = vst [vmem:[#allocation82_spill] sm:$0xff] %v5690_v1  ;;  %v2773_v5 = vand.u32 4294901760, %v5656_v30  ;;  %v5710_v18 = vsub.f32 %v137_v41, %v5658_v27  ;;  %v5717_v38 = vsub.f32 %v140_v34, %v5675_v53  ;;  %v5722_v41 = vsub.f32 %v143_v15, %v5688_v50  ;;  %v65_v34 = vld [vmem:[%s6334_s2 + $0xe0] sm:$0xff] }
  0x60   :  { %v5695_v48 = vsub.f32 %v5017_v7, %v6687_v54  ;;  %v5700_v3 = vsub.f32 %v5030_v28, %v6689_v19  ;;  %v5705_v46 = vsub.f32 %v5622_v20, %v6691_v37  ;;  %v63_v7 = vld [vmem:[%s6334_s2 + $0xd0] sm:$0xff]  ;;  %3713 = vmatmul.mubr.f32.gmra.mrb[12].mxu0 %v429_v16  ;;  %v479_v28 = vand.u32 4294901760, %v5667_v26  ;;  %v64_v16 = vld [vmem:[%s6334_s2 + $0xd8] sm:$0xff] }
  0x61   :  { %6692 = vst [vmem:[#allocation85_spill] sm:$0xff] %v5710_v18  ;;  %v690_v54 = vand.u32 4294901760, %v689_v23  ;;  %v2780_v19 = vand.u32 4294901760, %v2779_v47  ;;  %6693 = vst [vmem:[#allocation86_spill] sm:$0xff] %v5717_v38  ;;  %4399 = vmatpush3.bf16.xpose.msra.mxu0 %v5554_v0  ;;  %3715 = vmatprep.mubr.f32.mxu0 %v439_v49  ;;  %v489_v37 = vand.u32 4294901760, %v5683_v58  ;;  %v697_v30 = vand.u32 4294901760, %v696_v62 }
  0x62   :  { %6688 = vst [vmem:[#allocation83_spill] sm:$0xff] %v5695_v48  ;;  %6690 = vst [vmem:[#allocation84_spill] sm:$0xff] %v5700_v3  ;;  %4401 = vmatprep.subr.bf16.mxu0 %v4400_v24  ;;  %v5732_v0 = vsub.f32 %v146_v52, %v5690_v1  ;;  %v149_v15 = vsel %vm69_vm0, %v63_v7, 0  ;;  %4579 = vmatpush3.bf16.xpose.msra.mxu1 %v5541_v35  ;;  %v499_v26 = vand.u32 4294901760, %v5705_v46  ;;  %v6696_v23 = vand.u32 4294901760, %v5648_v13 }
  0x63   :  { %6694 = vst [vmem:[#allocation87_spill] sm:$0xff] %v5722_v41  ;;  %v5745_v25 = vand.u32 4294901760, %v149_v15  ;;  %v6698_v52 = vand.u32 4294901760, %v5569_v55  ;;  %4580 = vmatprep.subr.bf16.mxu1 %v6576_v31  ;;  %v152_v46 = vsel %vm69_vm0, %v64_v16, 0  ;;  %v155_v47 = vsel %vm69_vm0, %v65_v34, 0  ;;  %v66_v55 = vld [vmem:[%s6334_s2 + $0xe8] sm:$0xff] }
  0x64   :  { %6695 = vst [vmem:[#allocation88_spill] sm:$0xff] %v5732_v0  ;;  %v5742_v58 = vsub.f32 %v5648_v13, %v6696_v23  ;;  %v4404_v23 = vpack.c.bf16 %v697_v30, %v690_v54  ;;  %v6699_v62 = vand.u32 4294901760, %v5127_v8  ;;  %v6703_v30 = vand.u32 4294901760, %v5700_v3 }
  0x65   :  { %6697 = vst [vmem:[#allocation89_spill] sm:$0xff] %v5745_v25  ;;  %3716 = vmatmul.mubr.f32.gmra.mrb[14].mxu0 %v6698_v52  ;;  %v6700_v52 = vand.u32 4294901760, %v5059_v44  ;;  %v4584_v7 = vpack.c.bf16 %v2780_v19, %v2773_v5  ;;  %v5781_v20 = vsub.f32 %v149_v15, %v5745_v25  ;;  %v158_v19 = vsel %vm69_vm0, %v66_v55, 0 }
  0x66   :  { %3718 = vmatprep.mubr.f32.mxu0 %v459_v29  ;;  %v5758_v13 = vsub.f32 %v5127_v8, %v6699_v62  ;;  %v6702_v29 = vand.u32 4294901760, %v5695_v48  ;;  %v710_v34 = vsub.f32 %v5700_v3, %v6703_v30  ;;  %v6704_v62 = vand.u32 4294901760, %v5062_v43 }
  0x67   :  { %v5766_v35 = vsub.f32 %v5059_v44, %v6700_v52  ;;  %v5783_v44 = vand.u32 4294901760, %v152_v46  ;;  %v5785_v52 = vand.u32 4294901760, %v155_v47  ;;  %v6709_v30 = vand.u32 4294901760, %v5717_v38 }
  0x68   :  { %v703_v54 = vsub.f32 %v5695_v48, %v6702_v29  ;;  %v5778_v49 = vsub.f32 %v5062_v43, %v6704_v62  ;;  %v6708_v29 = vand.u32 4294901760, %v5710_v18  ;;  %v6710_v43 = vand.u32 4294901760, %v5161_v22 }
  0x69   :  { %6701 = vst [vmem:[#allocation90_spill] sm:$0xff] %v5766_v35  ;;  %6706 = vst [vmem:[#allocation92_spill] sm:$0xff] %v5783_v44  ;;  %3719 = vmatmul.mubr.f32.gmra.mrb[16].mxu0 %v469_v2  ;;  %v528_v1 = vsub.f32 %v5717_v38, %v6709_v30  ;;  %v509_v15 = vand.u32 4294901760, %v5742_v58  ;;  %v6711_v2 = vand.u32 4294901760, %v5722_v41  ;;  %v67_v30 = vld [vmem:[%s6334_s2 + $0xf0] sm:$0xff]  ;;  %v711_v58 = vand.u32 4294901760, %v710_v34 }
  0x6a   :  { %6705 = vst [vmem:[#allocation91_spill] sm:$0xff] %v5778_v49  ;;  %6707 = vst [vmem:[#allocation93_spill] sm:$0xff] %v5785_v52  ;;  %v518_v16 = vsub.f32 %v5710_v18, %v6708_v29  ;;  %v5796_v5 = vsub.f32 %v5161_v22, %v6710_v43  ;;  %4403 = vmatpush3.bf16.xpose.msra.mxu0 %v4400_v24  ;;  %3721 = vmatprep.mubr.f32.mxu0 %v479_v28  ;;  %v6712_v43 = vand.u32 4294901760, %v5732_v0 }
  0x6b   :  { %v538_v62 = vsub.f32 %v5722_v41, %v6711_v2  ;;  %4405 = vmatprep.subr.bf16.mxu0 %v4404_v23  ;;  %v704_v28 = vand.u32 4294901760, %v703_v54  ;;  %v68_v2 = vld [vmem:[%s6334_s2 + $0xf8] sm:$0xff]  ;;  %4582 = vmatpush3.bf16.xpose.msra.mxu1 %v5645_v33  ;;  %v5820_v18 = vsub.f32 %v152_v46, %v5783_v44  ;;  %v5823_v41 = vsub.f32 %v155_v47, %v5785_v52  ;;  %s4755_s2 = smov [#allocation4]  }
  0x6c   :  { %v5811_v24 = vsub.f32 %v5732_v0, %v6712_v43  ;;  %v5825_v43 = vand.u32 4294901760, %v158_v19  ;;  %4583 = vmatprep.subr.bf16.mxu1 %v6576_v31  ;;  %v519_v54 = vand.u32 4294901760, %v518_v16  ;;  %v529_v34 = vand.u32 4294901760, %v528_v1  ;;  %s3261_s26 = sshll.u32 %s4755_s2, 4  ;;  %s3262_s26 = int_to_ptr.vmem [resolvable:$true] %s3261_s26 }
  0x6d   :  { %3722 = vmatmul.mubr.f32.gmra.mrb[18].mxu0 %v489_v37  ;;  %v2794_v55 = vand.u32 4294901760, %v5796_v5  ;;  %v161_v0 = vsel %vm69_vm0, %v67_v30, 0  ;;  %v539_v33 = vand.u32 4294901760, %v538_v62  ;;  %v6714_v29 = vand.u32 4294901760, %v5766_v35  ;;  %s4725_s27 = scalar_lea.vmem %s3262_s26, 16  ;;  %s4729_s28 = scalar_lea.vmem %s3262_s26, 32 }
  0x6e   :  { %6713 = vst [vmem:[#allocation94_spill] sm:$0xff] %v5825_v43  ;;  %3724 = vmatprep.mubr.f32.mxu0 %v499_v26  ;;  %v5833_v38 = vand.u32 4294901760, %v161_v0  ;;  %v164_v47 = vsel %vm69_vm0, %v68_v2, 0  ;;  %v549_v37 = vand.u32 4294901760, %v5811_v24  ;;  %v4408_v52 = vpack.c.bf16 %v711_v58, %v704_v28  ;;  %p4726_p0 = scmp.ne.s32.totalorder %s3262_s26, %s4725_s27  ;;  %p4730_p1 = scmp.lt.s32.totalorder %s3262_s26, %s3262_s26 }
  0x6f   :  { %v717_v46 = vsub.f32 %v5766_v35, %v6714_v29  ;;  %v6716_v16 = vand.u32 4294901760, %v5778_v49  ;;  %v6717_v26 = vand.u32 4294901760, %v5781_v20  ;;  %v6502_v30 = vand.u32 4294901760, %v5820_v18  ;;  %p4731_p2 = scmp.lt.s32.totalorder %s4729_s28, %s4725_s27 }
  0x70   :  { %6715 = vst [vmem:[#allocation95_spill] sm:$0xff] %v5833_v38  ;;  %v6504_v29 = vand.u32 4294901760, %v5823_v41  ;;  %v5847_v44 = vsub.f32 %v158_v19, %v5825_v43  ;;  %v5850_v24 = vsub.f32 %v161_v0, %v5833_v38  ;;  %v5852_v28 = vand.u32 4294901760, %v164_v47 }
  0x71   :  { %v724_v1 = vsub.f32 %v5778_v49, %v6716_v16  ;;  %v558_v62 = vsub.f32 %v5781_v20, %v6717_v26  ;;  %3725 = vmatmul.mubr.f32.gmra.mrb[20].mxu0 %v509_v15  ;;  %v5856_v58 = vpack.c.bf16 %v5290_v42, %v5268_v4  ;;  %v718_v16 = vand.u32 4294901760, %v717_v46  ;;  %p4732_p3 = por %p4731_p2, %p4730_p1 }
  0x72   :  { %6718 = vst [vmem:[#allocation96_spill] sm:$0xff] %v5847_v44  ;;  %6719 = vst [vmem:[#allocation97_spill] sm:$0xff] %v5850_v24  ;;  %4407 = vmatpush3.bf16.xpose.msra.mxu0 %v4404_v23  ;;  %3727 = vmatprep.mubr.f32.mxu0 %v519_v54  ;;  %v5862_v19 = vpack.c.bf16 %v5378_v11, %v5368_v12  ;;  %v5868_v15 = vpack.c.bf16 %v5499_v51, %v5474_v61  ;;  %v6722_v54 = vand.u32 4294901760, %v5165_v45 }
  0x73   :  { %6720 = vst [vmem:[#allocation98_spill] sm:$0xff] %v5852_v28  ;;  %4409 = vmatprep.subr.bf16.mxu0 %v4408_v52  ;;  %v725_v26 = vand.u32 4294901760, %v724_v1  ;;  %v5874_v23 = vpack.c.bf16 %v5599_v60, %v5588_v14  ;;  %4585 = vmatpush3.bf16.xpose.msra.mxu1 %v4584_v7  ;;  %v5881_v0 = vpack.c.bf16 %v5700_v3, %v5695_v48  ;;  %v559_v1 = vand.u32 4294901760, %v558_v62  ;;  %p4733_p4 = pnand %p4732_p3, %p4726_p0 }
  0x74   :  { %v5887_v5 = vpack.c.bf16 %v5778_v49, %v5766_v35  ;;  %4586 = vmatprep.subr.bf16.mxu1 %v6576_v31  ;;  %v568_v7 = vsub.f32 %v5820_v18, %v6502_v30  ;;  %v5895_v2 = vsub.f32 %v164_v47, %v5852_v28  ;;  %v6721_v3 = vand.u32 4294901760, %v5758_v13 }
  0x75   :  { %3728 = vmatmul.mubr.f32.gmra.mrb[22].mxu0 %v529_v34  ;;  %v578_v34 = vsub.f32 %v5823_v41, %v6504_v29  ;;  %v4412_v35 = vpack.c.bf16 %v725_v26, %v718_v16  ;;  %v2800_v47 = vsub.f32 %v5165_v45, %v6722_v54  ;;  %v6723_v48 = vand.u32 4294901760, %v5169_v21  ;;  %v6726_v54 = vld [vmem:[#allocation26_spill] sm:$0xff] }
  0x76   :  { %3730 = vmatprep.mubr.f32.mxu0 %v539_v33  ;;  %v4587_v30 = vpack.c.bf16 %v2794_v55, %v6721_v3  ;;  %v569_v33 = vand.u32 4294901760, %v568_v7  ;;  %v6724_v62 = vand.u32 4294901760, %v5847_v44  ;;  %v6507_v49 = vand.u32 4294901760, %v5895_v2 }
  0x77   :  { %v2807_v46 = vsub.f32 %v5169_v21, %v6723_v48  ;;  %v579_v13 = vand.u32 4294901760, %v578_v34  ;;  %v6725_v3 = vand.u32 4294901760, %v5850_v24  ;;  %v2801_v16 = vand.u32 4294901760, %v2800_v47 }
  0x78   :  { %v588_v29 = vsub.f32 %v5847_v44, %v6724_v62  ;;  %v6731_v62 = vld [vmem:[#allocation15_spill] sm:$0xff] }
  0x79   :  { %3731 = vmatmul.mubr.f32.gmra.mrb[24].mxu0 %v549_v37  ;;  %v598_v55 = vsub.f32 %v5850_v24, %v6725_v3  ;;  %v2808_v26 = vand.u32 4294901760, %v2807_v46  ;;  %v608_v37 = vsub.f32 %v5895_v2, %v6507_v49  ;;  %v6729_v46 = vld [vmem:[#allocation44_spill] sm:$0xff]  ;;  %v6743_v49 = vld [vmem:[#allocation55_spill] sm:$0xff] }
  0x7a   :  { %4411 = vmatpush3.bf16.xpose.msra.mxu0 %v4408_v52  ;;  %3733 = vmatprep.mubr.f32.mxu0 %v559_v1  ;;  %v589_v48 = vand.u32 4294901760, %v588_v29  ;;  %v4416_v1 = vpack.c.bf16 %v6726_v54, %v5078_v9  ;;  %v6728_v29 = vld [vmem:[#allocation43_spill] sm:$0xff]  ;;  %v6732_v3 = vld [vmem:[#allocation24_spill] sm:$0xff] }
  0x7b   :  { %4413 = vmatprep.subr.bf16.mxu0 %v4412_v35  ;;  %4588 = vmatpush3.bf16.xpose.msra.mxu1 %v4587_v30  ;;  %v599_v52 = vand.u32 4294901760, %v598_v55  ;;  %v4590_v7 = vpack.c.bf16 %v2808_v26, %v2801_v16  ;;  %v609_v34 = vand.u32 4294901760, %v608_v37  ;;  %v6727_v30 = vld [vmem:[#allocation21_spill] sm:$0xff]  ;;  %v4420_v47 = vpack.c.bf16 %v6729_v46, %v6728_v29  ;;  %v6733_v55 = vld [vmem:[#allocation28_spill] sm:$0xff]  ;;  %v6734_v16 = vld [vmem:[#allocation30_spill] sm:$0xff] }
  0x7c   :  { %4589 = vmatprep.subr.bf16.mxu1 %v6576_v31  ;;  %v6735_v26 = vld [vmem:[#allocation40_spill] sm:$0xff]  ;;  %v6737_v37 = vld [vmem:[#allocation17_spill] sm:$0xff] }
  0x7d   :  { %3734 = vmatmul.mubr.f32.gmra.mrb[26].mxu0 %v569_v33  ;;  %v6730_v33 = vld [vmem:[#allocation14_spill] sm:$0xff] }
  0x7e   :  { %3736 = vmatprep.mubr.f32.mxu0 %v579_v13  ;;  %v4593_v13 = vpack.c.bf16 %v6731_v62, %v6730_v33 }
  0x81   :  { %3737 = vmatmul.mubr.f32.gmra.mrb[28].mxu0 %v589_v48  ;;  %v6736_v48 = vld [vmem:[#allocation16_spill] sm:$0xff] }
  0x82   :  { %4415 = vmatpush3.bf16.xpose.msra.mxu0 %v4412_v35  ;;  %3739 = vmatprep.mubr.f32.mxu0 %v599_v52  ;;  %v6505_v35 = vmov 1.0   ;;  %v4596_v52 = vpack.c.bf16 %v6737_v37, %v6736_v48 }
  0x83   :  { %4417 = vmatprep.subr.bf16.mxu0 %v4416_v1  ;;  %4591 = vmatpush3.bf16.xpose.msra.mxu1 %v4590_v7  ;;  %v6739_v7 = vld [vmem:[#allocation47_spill] sm:$0xff] }
  0x84   :  { %4592 = vmatprep.subr.bf16.mxu1 %v6576_v31 }
  0x85   :  { %3740 = vmatmul.mubr.f32.gmra.mrb[30].mxu0 %v609_v34  ;;  %v6740_v34 = vld [vmem:[#allocation48_spill] sm:$0xff] }
  0x86   :  { %3774 = vmatprep.mubr.f32.mxu0 %v6727_v30  ;;  %v6796_v30 = vld [vmem:[#allocation85_spill] sm:$0xff] }
  0x89   :  { %3775 = vmatmul.mubr.f32.vlgmr.msra.gmra.mrb[0].mxu0 %v6732_v3  ;;  %v6795_v3 = vld [vmem:[#allocation78_spill] sm:$0xff] }
  0x8a   :  { %4419 = vmatpush3.bf16.xpose.msra.mxu0 %v4416_v1  ;;  %3777 = vmatprep.mubr.f32.mxu0 %v6733_v55  ;;  %v6738_v1 = vld [vmem:[#allocation42_spill] sm:$0xff]  ;;  %v6793_v55 = vld [vmem:[#allocation75_spill] sm:$0xff] }
  0x8b   :  { %4210 = vmatmul.mubr.msk.f32.vlgmr.msra.gmra.mrb[0].mxu1 %vm69_vm0, %v6505_v35  ;;  %4421 = vmatprep.subr.bf16.mxu0 %v4420_v47  ;;  %v6742_v35 = vld [vmem:[#allocation52_spill] sm:$0xff] }
  0x8c   :  { %4594 = vmatpush3.bf16.xpose.msra.mxu1 %v4593_v13  ;;  %4244 = vmatprep.mubr.msk.f32.mxu1 %vm4751_vm1, %v6644_v40  ;;  %v6741_v13 = vld [vmem:[#allocation50_spill] sm:$0xff] }
  0x8d   :  { %3778 = vmatmul.mubr.f32.gmra.mrb[32].mxu0 %v6734_v16  ;;  %4595 = vmatprep.subr.bf16.mxu1 %v6576_v31  ;;  %v6789_v16 = vld [vmem:[#allocation70_spill] sm:$0xff] }
  0x8e   :  { %3780 = vmatprep.mubr.f32.mxu0 %v6735_v26  ;;  %v6787_v26 = vld [vmem:[#allocation67_spill] sm:$0xff] }
  0x91   :  { %3781 = vmatmul.mubr.f32.gmra.mrb[34].mxu0 %v6738_v1  ;;  %v6785_v1 = vld [vmem:[#allocation19_spill] sm:$0xff] }
  0x92   :  { %4423 = vmatpush3.bf16.xpose.msra.mxu0 %v4420_v47  ;;  %3783 = vmatprep.mubr.f32.mxu0 %v6739_v7  ;;  %v6744_v47 = vpack.c.bf16 %v4978_v57, %v4976_v56  ;;  %v6745_v7 = vld [vmem:[#allocation56_spill] sm:$0xff] }
  0x93   :  { %4425 = vmatprep.subr.bf16.mxu0 %v5856_v58 }
  0x94   :  { %4597 = vmatpush3.bf16.xpose.msra.mxu1 %v4596_v52  ;;  %v6746_v52 = vld [vmem:[#allocation58_spill] sm:$0xff] }
  0x95   :  { %3784 = vmatmul.mubr.f32.gmra.mrb[36].mxu0 %v6740_v34  ;;  %4598 = vmatprep.subr.bf16.mxu1 %v6576_v31  ;;  %v6783_v34 = vld [vmem:[#allocation63_spill] sm:$0xff] }
  0x96   :  { %3786 = vmatprep.mubr.f32.mxu0 %v6741_v13  ;;  %v6782_v13 = vld [vmem:[#allocation61_spill] sm:$0xff] }
  0x99   :  { %3787 = vmatmul.mubr.f32.gmra.mrb[38].mxu0 %v6742_v35  ;;  %v6781_v35 = vld [vmem:[#allocation59_spill] sm:$0xff] }
  0x9a   :  { %4427 = vmatpush3.bf16.xpose.msra.mxu0 %v5856_v58  ;;  %3789 = vmatprep.mubr.f32.mxu0 %v6743_v49  ;;  %v6747_v58 = vpack.c.bf16 %v5001_v59, %v4992_v36  ;;  %v6748_v49 = vld [vmem:[#allocation64_spill] sm:$0xff] }
  0x9b   :  { %4429 = vmatprep.subr.bf16.mxu0 %v5862_v19 }
  0x9c   :  { %4600 = vmatpush3.bf16.xpose.msra.mxu1 %v6744_v47  ;;  %v6749_v47 = vld [vmem:[#allocation66_spill] sm:$0xff] }
  0x9d   :  { %3790 = vmatmul.mubr.f32.gmra.mrb[40].mxu0 %v6745_v7  ;;  %4601 = vmatprep.subr.bf16.mxu1 %v6576_v31  ;;  %v6750_v7 = vld [vmem:[#allocation68_spill] sm:$0xff] }
  0x9e   :  { %3792 = vmatprep.mubr.f32.mxu0 %v6746_v52  ;;  %v6780_v52 = vld [vmem:[#allocation12_spill] sm:$0xff] }
  0xa1   :  { %3793 = vmatmul.mubr.f32.gmra.mrb[42].mxu0 %v5389_v63  ;;  %v6751_v63 = vld [vmem:[#allocation71_spill] sm:$0xff] }
  0xa2   :  { %4431 = vmatpush3.bf16.xpose.msra.mxu0 %v5862_v19  ;;  %3795 = vmatprep.mubr.f32.mxu0 %v5415_v17  ;;  %v6752_v19 = vpack.c.bf16 %v5045_v32, %v5014_v6  ;;  %v6753_v17 = vld [vmem:[#allocation72_spill] sm:$0xff] }
  0xa3   :  { %4433 = vmatprep.subr.bf16.mxu0 %v5868_v15 }
  0xa4   :  { %4603 = vmatpush3.bf16.xpose.msra.mxu1 %v6747_v58  ;;  %v6754_v58 = vld [vmem:[#allocation73_spill] sm:$0xff] }
  0xa5   :  { %3796 = vmatmul.mubr.f32.gmra.mrb[44].mxu0 %v6748_v49  ;;  %4604 = vmatprep.subr.bf16.mxu1 %v6576_v31  ;;  %v6755_v49 = vld [vmem:[#allocation76_spill] sm:$0xff] }
  0xa6   :  { %3798 = vmatprep.mubr.f32.mxu0 %v6749_v47  ;;  %v6779_v47 = vld [vmem:[#allocation13_spill] sm:$0xff] }
  0xa9   :  { %3799 = vmatmul.mubr.f32.gmra.mrb[46].mxu0 %v6750_v7  ;;  %v6778_v7 = vld [vmem:[#allocation57_spill] sm:$0xff] }
  0xaa   :  { %4435 = vmatpush3.bf16.xpose.msra.mxu0 %v5868_v15  ;;  %3801 = vmatprep.mubr.f32.mxu0 %v6751_v63  ;;  %v6756_v15 = vpack.c.bf16 %v5086_v39, %v5051_v10  ;;  %v6777_v63 = vld [vmem:[#allocation54_spill] sm:$0xff] }
  0xab   :  { %4437 = vmatprep.subr.bf16.mxu0 %v5874_v23 }
  0xac   :  { %4606 = vmatpush3.bf16.xpose.msra.mxu1 %v6752_v19  ;;  %v6757_v19 = vld [vmem:[#allocation82_spill] sm:$0xff] }
  0xad   :  { %3802 = vmatmul.mubr.f32.gmra.mrb[48].mxu0 %v6753_v17  ;;  %4607 = vmatprep.subr.bf16.mxu1 %v6576_v31  ;;  %v6776_v17 = vld [vmem:[#allocation53_spill] sm:$0xff] }
  0xae   :  { %3804 = vmatprep.mubr.f32.mxu0 %v6754_v58  ;;  %v6775_v58 = vld [vmem:[#allocation51_spill] sm:$0xff] }
  0xb1   :  { %3805 = vmatmul.mubr.f32.gmra.mrb[50].mxu0 %v6755_v49  ;;  %v6774_v49 = vld [vmem:[#allocation11_spill] sm:$0xff] }
  0xb2   :  { %4439 = vmatpush3.bf16.xpose.msra.mxu0 %v5874_v23  ;;  %3807 = vmatprep.mubr.f32.mxu0 %v5658_v27  ;;  %v6758_v23 = vpack.c.bf16 %v5161_v22, %v5127_v8  ;;  %v6759_v27 = vld [vmem:[#allocation92_spill] sm:$0xff]  ;;  %v6802_v22 = vld [vmem:[#allocation33_spill] sm:$0xff]  ;;  %v6805_v8 = vand.u32 4294901760, %v6726_v54 }
  0xb3   :  { %4441 = vmatprep.subr.bf16.mxu0 %v5881_v0 }
  0xb4   :  { %4609 = vmatpush3.bf16.xpose.msra.mxu1 %v6756_v15  ;;  %v6760_v15 = vld [vmem:[#allocation93_spill] sm:$0xff] }
  0xb5   :  { %3808 = vmatmul.mubr.f32.gmra.mrb[52].mxu0 %v5675_v53  ;;  %4610 = vmatprep.subr.bf16.mxu1 %v6576_v31  ;;  %v6773_v53 = vld [vmem:[#allocation10_spill] sm:$0xff] }
  0xb6   :  { %3810 = vmatprep.mubr.f32.mxu0 %v5688_v50  ;;  %v6772_v50 = vld [vmem:[#allocation49_spill] sm:$0xff] }
  0xb9   :  { %3811 = vmatmul.mubr.f32.gmra.mrb[54].mxu0 %v6757_v19  ;;  %v6771_v19 = vld [vmem:[#allocation46_spill] sm:$0xff] }
  0xba   :  { %4443 = vmatpush3.bf16.xpose.msra.mxu0 %v5881_v0  ;;  %3813 = vmatprep.mubr.f32.mxu0 %v5745_v25  ;;  %v6761_v0 = vld [vmem:[#allocation7_spill] sm:$0xff]  ;;  %v6762_v25 = vpack.c.bf16 %v5169_v21, %v5165_v45  ;;  %v6799_v21 = vld [vmem:[#allocation86_spill] sm:$0xff]  ;;  %v6801_v45 = vld [vmem:[#allocation88_spill] sm:$0xff] }
  0xbb   :  { %4445 = vmatprep.subr.bf16.mxu0 %v5887_v5 }
  0xbc   :  { %4612 = vmatpush3.bf16.xpose.msra.mxu1 %v6758_v23  ;;  %v6763_v23 = vld [vmem:[#allocation23_spill] sm:$0xff] }
  0xbd   :  { %3814 = vmatmul.mubr.f32.gmra.mrb[56].mxu0 %v6759_v27  ;;  %4613 = vmatprep.subr.bf16.mxu1 %v6576_v31  ;;  %v6764_v27 = vld [vmem:[#allocation27_spill] sm:$0xff] }
  0xbe   :  { %3816 = vmatprep.mubr.f32.mxu0 %v6760_v15  ;;  %v6768_v15 = vld [vmem:[#allocation9_spill] sm:$0xff] }
  0xc1   :  { %3817 = vmatmul.mubr.f32.gmra.mrb[58].mxu0 %v5825_v43  ;;  %v6765_v43 = vld [vmem:[#allocation34_spill] sm:$0xff] }
  0xc2   :  { %4447 = vmatpush3.bf16.xpose.msra.mxu0 %v5887_v5  ;;  %3819 = vmatprep.mubr.f32.mxu0 %v5833_v38  ;;  %v6766_v5 = vld [vmem:[#allocation29_spill] sm:$0xff]  ;;  %v6767_v38 = vld [vmem:[#allocation8_spill] sm:$0xff] }
  0xc3   :  { %4449 = vmatprep.subr.bf16.mxu0 %v6761_v0 }
  0xc4   :  { %4615 = vmatpush3.bf16.xpose.msra.mxu1 %v6762_v25  ;;  %v6769_v25 = vld [vmem:[#allocation36_spill] sm:$0xff] }
  0xc5   :  { %3820 = vmatmul.mubr.f32.gmra.mrb[60].mxu0 %v5852_v28  ;;  %4616 = vmatprep.subr.bf16.mxu1 %v6576_v31  ;;  %v6770_v28 = vld [vmem:[#allocation45_spill] sm:$0xff] }
  0xc6   :  { %3854 = vmatprep.mubr.f32.mxu0 %v6763_v23 }
  0xc9   :  { %3855 = vmatmul.mubr.f32.vlgmr.msra.gmra.mrb[0].mxu0 %v6764_v27 }
  0xca   :  { %4451 = vmatpush3.bf16.xpose.msra.mxu0 %v6761_v0  ;;  %3857 = vmatprep.mubr.f32.mxu0 %v6765_v43  ;;  %v6797_v0 = vld [vmem:[#allocation31_spill] sm:$0xff] }
  0xcb   :  { %4245 = vmatmul.mubr.f32.vlgmr.msra.gmra.mrb[0].mxu1 %v6766_v5  ;;  %4453 = vmatprep.subr.bf16.mxu0 %v6767_v38 }
  0xcc   :  { %4618 = vmatpush3.bf16.xpose.msra.mxu1 %v6768_v15  ;;  %4279 = vmatprep.mubr.msk.f32.mxu1 %vm4751_vm1, %v6644_v40  ;;  %v6790_v15 = vld [vmem:[#allocation74_spill] sm:$0xff] }
  0xcd   :  { %3858 = vmatmul.mubr.f32.gmra.mrb[62].mxu0 %v6769_v25  ;;  %4619 = vmatprep.subr.bf16.mxu1 %v6576_v31 }
  0xce   :  { %3860 = vmatprep.mubr.f32.mxu0 %v6770_v28 }
  0xd1   :  { %3861 = vmatmul.mubr.f32.gmra.mrb[64].mxu0 %v6771_v19 }
  0xd2   :  { %4455 = vmatpush3.bf16.xpose.msra.mxu0 %v6767_v38  ;;  %3863 = vmatprep.mubr.f32.mxu0 %v6772_v50  ;;  %v6791_v38 = vld [vmem:[#allocation20_spill] sm:$0xff] }
  0xd3   :  { %4457 = vmatprep.subr.bf16.mxu0 %v6773_v53 }
  0xd4   :  { %4621 = vmatpush3.bf16.xpose.msra.mxu1 %v6774_v49  ;;  %v6784_v49 = vld [vmem:[#allocation65_spill] sm:$0xff] }
  0xd5   :  { %3864 = vmatmul.mubr.f32.gmra.mrb[66].mxu0 %v6775_v58  ;;  %4622 = vmatprep.subr.bf16.mxu1 %v6576_v31 }
  0xd6   :  { %3866 = vmatprep.mubr.f32.mxu0 %v6776_v17 }
  0xd9   :  { %3867 = vmatmul.mubr.f32.gmra.mrb[68].mxu0 %v6777_v63 }
  0xda   :  { %4459 = vmatpush3.bf16.xpose.msra.mxu0 %v6773_v53  ;;  %3869 = vmatprep.mubr.f32.mxu0 %v6778_v7  ;;  %v6786_v53 = vld [vmem:[#allocation18_spill] sm:$0xff] }
  0xdb   :  { %4461 = vmatprep.subr.bf16.mxu0 %v6779_v47 }
  0xdc   :  { %4624 = vmatpush3.bf16.xpose.msra.mxu1 %v6780_v52  ;;  %v6788_v52 = vld [vmem:[#allocation69_spill] sm:$0xff] }
  0xdd   :  { %3870 = vmatmul.mubr.f32.gmra.mrb[70].mxu0 %v6781_v35  ;;  %4625 = vmatprep.subr.bf16.mxu1 %v6576_v31 }
  0xde   :  { %3872 = vmatprep.mubr.f32.mxu0 %v6782_v13 }
  0xe1   :  { %3873 = vmatmul.mubr.f32.gmra.mrb[72].mxu0 %v6783_v34 }
  0xe2   :  { %4463 = vmatpush3.bf16.xpose.msra.mxu0 %v6779_v47  ;;  %3875 = vmatprep.mubr.f32.mxu0 %v6784_v49  ;;  %v6792_v47 = vld [vmem:[#allocation22_spill] sm:$0xff] }
  0xe3   :  { %4465 = vmatprep.subr.bf16.mxu0 %v6785_v1 }
  0xe4   :  { %4627 = vmatpush3.bf16.xpose.msra.mxu1 %v6786_v53  ;;  %v6794_v53 = vld [vmem:[#allocation77_spill] sm:$0xff] }
  0xe5   :  { %3876 = vmatmul.mubr.f32.gmra.mrb[74].mxu0 %v6787_v26  ;;  %4628 = vmatprep.subr.bf16.mxu1 %v6576_v31 }
  0xe6   :  { %3878 = vmatprep.mubr.f32.mxu0 %v6788_v52 }
  0xe9   :  { %3879 = vmatmul.mubr.f32.gmra.mrb[76].mxu0 %v6789_v16 }
  0xea   :  { %4467 = vmatpush3.bf16.xpose.msra.mxu0 %v6785_v1  ;;  %3881 = vmatprep.mubr.f32.mxu0 %v6790_v15  ;;  %v6798_v1 = vld [vmem:[#allocation25_spill] sm:$0xff] }
  0xeb   :  { %4469 = vmatprep.subr.bf16.mxu0 %v6791_v38 }
  0xec   :  { %4630 = vmatpush3.bf16.xpose.msra.mxu1 %v6792_v47  ;;  %v6800_v47 = vld [vmem:[#allocation87_spill] sm:$0xff] }
  0xed   :  { %3882 = vmatmul.mubr.f32.gmra.mrb[78].mxu0 %v6793_v55  ;;  %4631 = vmatprep.subr.bf16.mxu1 %v6576_v31 }
  0xee   :  { %3884 = vmatprep.mubr.f32.mxu0 %v6794_v53 }
  0xf1   :  { %3885 = vmatmul.mubr.f32.gmra.mrb[80].mxu0 %v6795_v3 }
  0xf2   :  { %4471 = vmatpush3.bf16.xpose.msra.mxu0 %v6791_v38  ;;  %3887 = vmatprep.mubr.f32.mxu0 %v6796_v30  ;;  %v6803_v38 = vld [vmem:[#allocation35_spill] sm:$0xff] }
  0xf3   :  { %4473 = vmatprep.subr.bf16.mxu0 %v6797_v0 }
  0xf4   :  { %4633 = vmatpush3.bf16.xpose.msra.mxu1 %v6798_v1  ;;  %v6804_v1 = vand.u32 4294901760, %v5078_v9  ;;  %v6808_v9 = vand.u32 4294901760, %v6728_v29  ;;  %v6819_v29 = vand.u32 4294901760, %v6736_v48  ;;  %v6826_v48 = vand.u32 4294901760, %v5378_v11 }
  0xf5   :  { %3888 = vmatmul.mubr.f32.gmra.mrb[82].mxu0 %v6799_v21  ;;  %4634 = vmatprep.subr.bf16.mxu1 %v6576_v31 }
  0xf6   :  { %3890 = vmatprep.mubr.f32.mxu0 %v6800_v47  ;;  %v4480_v47 = vpack.c.bf16 %v6805_v8, %v6804_v1  ;;  %v6809_v8 = vand.u32 4294901760, %v6729_v46  ;;  %v6810_v1 = vand.u32 4294901760, %v6730_v33  ;;  %v6821_v33 = vand.u32 4294901760, %v6771_v19 }
  0xf8   :  { %v4484_v54 = vpack.c.bf16 %v6809_v8, %v6808_v9  ;;  %v6838_v8 = vand.u32 4294901760, %v6784_v49  ;;  %v6843_v49 = vand.u32 4294901760, %v5014_v6  ;;  %v6848_v6 = vand.u32 4294901760, %v6794_v53 }
  0xf9   :  { %3891 = vmatmul.mubr.f32.gmra.mrb[84].mxu0 %v6801_v45 }
  0xfa   :  { %4475 = vmatpush3.bf16.xpose.msra.mxu0 %v6797_v0  ;;  %3893 = vmatprep.mubr.f32.mxu0 %v5781_v20  ;;  %v6806_v0 = vld [vmem:[#allocation38_spill] sm:$0xff] }
  0xfb   :  { %4477 = vmatprep.subr.bf16.mxu0 %v6802_v22 }
  0xfc   :  { %4636 = vmatpush3.bf16.xpose.msra.mxu1 %v6803_v38  ;;  %v6807_v38 = vand.u32 4294901760, %v6763_v23  ;;  %v6814_v23 = vand.u32 4294901760, %v6766_v5  ;;  %v6835_v5 = vand.u32 4294901760, %v4992_v36  ;;  %v6840_v36 = vand.u32 4294901760, %v6788_v52 }
  0xfd   :  { %3894 = vmatmul.mubr.f32.gmra.mrb[86].mxu0 %v5820_v18  ;;  %4637 = vmatprep.subr.bf16.mxu1 %v6576_v31 }
  0xfe   :  { %3896 = vmatprep.mubr.f32.mxu0 %v5823_v41 }
 0x101   :  { %3897 = vmatmul.mubr.f32.gmra.mrb[88].mxu0 %v5847_v44  ;;  %v6812_v44 = vand.u32 4294901760, %v6764_v27  ;;  %v6817_v27 = vand.u32 4294901760, %v5268_v4  ;;  %v6824_v4 = vand.u32 4294901760, %v6776_v17  ;;  %v6831_v17 = vand.u32 4294901760, %v6781_v35 }
 0x102   :  { %4479 = vmatpush3.bf16.xpose.msra.mxu0 %v6802_v22  ;;  %3899 = vmatprep.mubr.f32.mxu0 %v5850_v24  ;;  %v6811_v22 = vand.u32 4294901760, %v6731_v62  ;;  %v6822_v62 = vand.u32 4294901760, %v6772_v50  ;;  %v6828_v50 = vand.u32 4294901760, %v4978_v57  ;;  %v6834_v57 = vand.u32 4294901760, %v5499_v51 }
 0x103   :  { %4481 = vmatprep.subr.bf16.mxu0 %v4480_v47  ;;  %v6837_v35 = vand.u32 4294901760, %v6783_v34  ;;  %v6839_v51 = vand.u32 4294901760, %v6787_v26  ;;  %v6842_v34 = vand.u32 4294901760, %v5599_v60  ;;  %v6845_v26 = vand.u32 4294901760, %v6789_v16  ;;  %v6851_v16 = vld [vmem:[#allocation84_spill] sm:$0xff] }
 0x104   :  { %4639 = vmatpush3.bf16.xpose.msra.mxu1 %v6806_v0  ;;  %v4641_v24 = vpack.c.bf16 %v6811_v22, %v6810_v1  ;;  %v6813_v0 = vand.u32 4294901760, %v6765_v43  ;;  %v6816_v22 = vand.u32 4294901760, %v6770_v28  ;;  %v6823_v28 = vand.u32 4294901760, %v6775_v58 }
 0x105   :  { %3900 = vmatmul.mubr.f32.gmra.mrb[90].mxu0 %v5895_v2  ;;  %4640 = vmatprep.subr.bf16.mxu1 %v6576_v31  ;;  %v6830_v58 = vand.u32 4294901760, %v6778_v7  ;;  %v6836_v7 = vand.u32 4294901760, %v5001_v59  ;;  %v6841_v59 = vand.u32 4294901760, %v5588_v14  ;;  %v6847_v60 = vand.u32 4294901760, %v6793_v55 }
 0x106   :  { %3934 = vmatprep.mubr.f32.mxu0 %v6807_v38  ;;  %v6815_v38 = vand.u32 4294901760, %v6769_v25  ;;  %v6855_v55 = vand.u32 4294901760, %v6795_v3  ;;  %v6862_v3 = vld [vmem:[#allocation91_spill] sm:$0xff] }
 0x107   :  { %v4650_v25 = vpack.c.bf16 %v6836_v7, %v6835_v5  ;;  %v6870_v5 = vand.u32 4294901760, %v5820_v18  ;;  %v6871_v7 = vand.u32 4294901760, %v5823_v41  ;;  %v6880_v18 = vld [vmem:[#allocation7_spill] sm:$0xff] }
 0x109   :  { %3935 = vmatmul.mubr.f32.vlgmr.msra.gmra.mrb[0].mxu0 %v6812_v44  ;;  %v6818_v44 = vand.u32 4294901760, %v5290_v42  ;;  %v6825_v42 = vand.u32 4294901760, %v5368_v12  ;;  %v6832_v12 = vand.u32 4294901760, %v6782_v13 }
 0x10a   :  { %4483 = vmatpush3.bf16.xpose.msra.mxu0 %v4480_v47  ;;  %3937 = vmatprep.mubr.f32.mxu0 %v6813_v0  ;;  %v6827_v47 = vand.u32 4294901760, %v4976_v56  ;;  %v6829_v0 = vand.u32 4294901760, %v6777_v63  ;;  %v6833_v56 = vand.u32 4294901760, %v5474_v61 }
 0x10b   :  { %4280 = vmatmul.mubr.f32.vlgmr.msra.gmra.mrb[0].mxu1 %v6814_v23  ;;  %4485 = vmatprep.subr.bf16.mxu0 %v4484_v54  ;;  %v4488_v43 = vpack.c.bf16 %v6818_v44, %v6817_v27  ;;  %v6844_v23 = vand.u32 4294901760, %v5045_v32  ;;  %v6846_v27 = vand.u32 4294901760, %v6790_v15  ;;  %v6849_v32 = vld [vmem:[#allocation83_spill] sm:$0xff]  ;;  %v6853_v15 = vand.u32 4294901760, %v5051_v10 }
 0x10c   :  { %4642 = vmatpush3.bf16.xpose.msra.mxu1 %v4641_v24  ;;  %4314 = vmatprep.mubr.msk.f32.mxu1 %vm4751_vm1, %v6644_v40  ;;  %v6820_v24 = vand.u32 4294901760, %v6737_v37  ;;  %v4492_v37 = vpack.c.bf16 %v6826_v48, %v6825_v42  ;;  %v4647_v19 = vpack.c.bf16 %v6828_v50, %v6827_v47  ;;  %v4496_v11 = vpack.c.bf16 %v6834_v57, %v6833_v56  ;;  %v6858_v10 = vld [vmem:[#allocation87_spill] sm:$0xff]  ;;  %v6860_v48 = vld [vmem:[#allocation90_spill] sm:$0xff] }
 0x10d   :  { %3938 = vmatmul.mubr.f32.gmra.mrb[92].mxu0 %v6815_v38  ;;  %4643 = vmatprep.subr.bf16.mxu1 %v6576_v31  ;;  %v4653_v38 = vpack.c.bf16 %v6844_v23, %v6843_v49  ;;  %v6850_v44 = vand.u32 4294901760, %v6849_v32  ;;  %v6857_v42 = vand.u32 4294901760, %v6799_v21  ;;  %v6863_v47 = vand.u32 4294901760, %v6862_v3  ;;  %v6902_v3 = vld [vmem:[#allocation60_spill] sm:$0xff] }
 0x10e   :  { %3940 = vmatprep.mubr.f32.mxu0 %v6816_v22  ;;  %v4644_v46 = vpack.c.bf16 %v6820_v24, %v6819_v29  ;;  %v6868_v21 = vand.u32 4294901760, %v6801_v45  ;;  %v6869_v57 = vand.u32 4294901760, %v5781_v20 }
 0x111   :  { %3941 = vmatmul.mubr.f32.gmra.mrb[94].mxu0 %v6821_v33 }
 0x112   :  { %4487 = vmatpush3.bf16.xpose.msra.mxu0 %v4484_v54  ;;  %3943 = vmatprep.mubr.f32.mxu0 %v6822_v62  ;;  %v4500_v54 = vpack.c.bf16 %v6842_v34, %v6841_v59 }
 0x113   :  { %4489 = vmatprep.subr.bf16.mxu0 %v4488_v43 }
 0x114   :  { %4645 = vmatpush3.bf16.xpose.msra.mxu1 %v4644_v46  ;;  %v6854_v46 = vand.u32 4294901760, %v5086_v39  ;;  %v6859_v39 = vand.u32 4294901760, %v6858_v10  ;;  %v6900_v10 = vld [vmem:[#allocation56_spill] sm:$0xff] }
 0x115   :  { %3944 = vmatmul.mubr.f32.gmra.mrb[96].mxu0 %v6823_v28  ;;  %4646 = vmatprep.subr.bf16.mxu1 %v6576_v31  ;;  %v6856_v28 = vand.u32 4294901760, %v6796_v30  ;;  %v6864_v30 = vld [vmem:[#allocation32_spill] sm:$0xff] }
 0x116   :  { %3946 = vmatprep.mubr.f32.mxu0 %v6824_v4  ;;  %v4656_v33 = vpack.c.bf16 %v6854_v46, %v6853_v15  ;;  %v6894_v46 = vld [vmem:[#allocation48_spill] sm:$0xff] }
 0x119   :  { %3947 = vmatmul.mubr.f32.gmra.mrb[98].mxu0 %v6829_v0  ;;  %v6865_v0 = vand.u32 4294901760, %v6864_v30 }
 0x11a   :  { %4491 = vmatpush3.bf16.xpose.msra.mxu0 %v4488_v43  ;;  %3949 = vmatprep.mubr.f32.mxu0 %v6830_v58  ;;  %v6852_v43 = vand.u32 4294901760, %v6851_v16  ;;  %v6866_v58 = vld [vmem:[#allocation37_spill] sm:$0xff]  ;;  %v6890_v16 = vld [vmem:[#allocation42_spill] sm:$0xff] }
 0x11b   :  { %4493 = vmatprep.subr.bf16.mxu0 %v4492_v37 }
 0x11c   :  { %4648 = vmatpush3.bf16.xpose.msra.mxu1 %v4647_v19  ;;  %v4504_v29 = vpack.c.bf16 %v6852_v43, %v6850_v44  ;;  %v6891_v43 = vld [vmem:[#allocation47_spill] sm:$0xff] }
 0x11d   :  { %3950 = vmatmul.mubr.f32.gmra.mrb[100].mxu0 %v6831_v17  ;;  %4649 = vmatprep.subr.bf16.mxu1 %v6576_v31  ;;  %v6867_v17 = vand.u32 4294901760, %v6866_v58  ;;  %v6906_v58 = vld [vmem:[#allocation64_spill] sm:$0xff] }
 0x11e   :  { %3952 = vmatprep.mubr.f32.mxu0 %v6832_v12  ;;  %v3699_v63 = vpop.f32.mrb[2].mxu0 }
 0x11f   :  { %v321_v9 = vpop.f32.mrb[3].mxu0  ;;  %v4659_v12 = vpack.c.bf16 %v6867_v17, %v6865_v0  ;;  %v6907_v17 = vld [vmem:[#allocation66_spill] sm:$0xff] }
 0x120   :  { %v6872_v9 = vld [vmem:[#allocation39_spill] sm:$0xff] }
 0x121   :  { %3953 = vmatmul.mubr.f32.gmra.mrb[102].mxu0 %v6837_v35  ;;  %v6873_v45 = vand.u32 4294901760, %v6872_v9  ;;  %v6874_v35 = vld [vmem:[#allocation41_spill] sm:$0xff] }
 0x122   :  { %4495 = vmatpush3.bf16.xpose.msra.mxu0 %v4492_v37  ;;  %3955 = vmatprep.mubr.f32.mxu0 %v6838_v8  ;;  %v3702_v61 = vpop.f32.mrb[4].mxu0  ;;  %v6861_v37 = vand.u32 4294901760, %v6860_v48  ;;  %v6875_v8 = vand.u32 4294901760, %v6874_v35  ;;  %v6913_v9 = vld [vmem:[#allocation73_spill] sm:$0xff] }
 0x123   :  { %4497 = vmatprep.subr.bf16.mxu0 %v4496_v11  ;;  %v341_v13 = vpop.f32.mrb[5].mxu0 }
 0x124   :  { %4651 = vmatpush3.bf16.xpose.msra.mxu1 %v4650_v25  ;;  %v4508_v50 = vpack.c.bf16 %v6863_v47, %v6861_v37  ;;  %v4662_v61 = vpack.c.bf16 %v6875_v8, %v6873_v45  ;;  %v6876_v13 = vld [vmem:[#allocation96_spill] sm:$0xff]  ;;  %v6903_v47 = vld [vmem:[#allocation62_spill] sm:$0xff] }
 0x125   :  { %3956 = vmatmul.mubr.f32.gmra.mrb[104].mxu0 %v6839_v51  ;;  %4652 = vmatprep.subr.bf16.mxu1 %v6576_v31  ;;  %v6877_v51 = vand.u32 4294901760, %v6876_v13  ;;  %v6914_v8 = vld [vmem:[#allocation76_spill] sm:$0xff]  ;;  %v6917_v13 = vld [vmem:[#allocation25_spill] sm:$0xff] }
 0x126   :  { %3958 = vmatprep.mubr.f32.mxu0 %v6840_v36  ;;  %v6878_v36 = vld [vmem:[#allocation97_spill] sm:$0xff] }
 0x127   :  { %v3705_v1 = vpop.f32.mrb[6].mxu0  ;;  %v6879_v59 = vand.u32 4294901760, %v6878_v36 }
 0x128   :  { %v361_v22 = vpop.f32.mrb[7].mxu0  ;;  %v6882_v1 = vld [vmem:[#allocation21_spill] sm:$0xff] }
 0x129   :  { %3959 = vmatmul.mubr.f32.gmra.mrb[106].mxu0 %v6845_v26  ;;  %v6884_v22 = vld [vmem:[#allocation28_spill] sm:$0xff]  ;;  %v6885_v26 = vmov 1.0  }
 0x12a   :  { %4499 = vmatpush3.bf16.xpose.msra.mxu0 %v4496_v11  ;;  %3961 = vmatprep.mubr.f32.mxu0 %v6846_v27  ;;  %v6886_v27 = vld [vmem:[#allocation8_spill] sm:$0xff] }
 0x12b   :  { %4501 = vmatprep.subr.bf16.mxu0 %v4500_v54  ;;  %v3708_v14 = vpop.f32.mrb[8].mxu0 }
 0x12c   :  { %4654 = vmatpush3.bf16.xpose.msra.mxu1 %v4653_v38  ;;  %v381_v52 = vpop.f32.mrb[9].mxu0  ;;  %v6883_v38 = vld [vmem:[#allocation24_spill] sm:$0xff]  ;;  %v6887_v14 = vld [vmem:[#allocation9_spill] sm:$0xff] }
 0x12d   :  { %3962 = vmatmul.mubr.f32.gmra.mrb[108].mxu0 %v6847_v60  ;;  %4655 = vmatprep.subr.bf16.mxu1 %v6576_v31  ;;  %v6888_v60 = vld [vmem:[#allocation30_spill] sm:$0xff] }
 0x12e   :  { %3964 = vmatprep.mubr.f32.mxu0 %v6848_v6  ;;  %v6889_v6 = vld [vmem:[#allocation40_spill] sm:$0xff] }
 0x12f   :  { %v3711_v24 = vpop.f32.mrb[10].mxu0 }
 0x130   :  { %v401_v62 = vpop.f32.mrb[11].mxu0  ;;  %v6893_v24 = vld [vmem:[#allocation11_spill] sm:$0xff] }
 0x131   :  { %3965 = vmatmul.mubr.f32.gmra.mrb[110].mxu0 %v6855_v55 }
 0x132   :  { %4503 = vmatpush3.bf16.xpose.msra.mxu0 %v4500_v54  ;;  %3967 = vmatprep.mubr.f32.mxu0 %v6856_v28  ;;  %v6881_v54 = vand.u32 4294901760, %v5895_v2  ;;  %v6896_v28 = vld [vmem:[#allocation52_spill] sm:$0xff] }
 0x133   :  { %4505 = vmatprep.subr.bf16.mxu0 %v4504_v29  ;;  %v3714_v53 = vpop.f32.mrb[12].mxu0 }
 0x134   :  { %4657 = vmatpush3.bf16.xpose.msra.mxu1 %v4656_v33  ;;  %v421_v4 = vpop.f32.mrb[13].mxu0  ;;  %v6895_v33 = vld [vmem:[#allocation50_spill] sm:$0xff]  ;;  %v6897_v53 = vld [vmem:[#allocation55_spill] sm:$0xff] }
 0x135   :  { %3968 = vmatmul.mubr.f32.gmra.mrb[112].mxu0 %v6857_v42  ;;  %4658 = vmatprep.subr.bf16.mxu1 %v6576_v31  ;;  %v6898_v4 = vld [vmem:[#allocation13_spill] sm:$0xff]  ;;  %v6899_v42 = vld [vmem:[#allocation12_spill] sm:$0xff] }
 0x136   :  { %3970 = vmatprep.mubr.f32.mxu0 %v6859_v39  ;;  %v6901_v39 = vld [vmem:[#allocation58_spill] sm:$0xff] }
 0x138   :  { %v3717_v19 = vpop.f32.mrb[14].mxu0 }
 0x139   :  { %v441_v56 = vpop.f32.mrb[15].mxu0  ;;  %3971 = vmatmul.mubr.f32.gmra.mrb[114].mxu0 %v6868_v21  ;;  %v6905_v19 = vld [vmem:[#allocation18_spill] sm:$0xff]  ;;  %v6908_v21 = vld [vmem:[#allocation68_spill] sm:$0xff] }
 0x13a   :  { %4507 = vmatpush3.bf16.xpose.msra.mxu0 %v4504_v29  ;;  %3973 = vmatprep.mubr.f32.mxu0 %v6869_v57  ;;  %v6892_v29 = vld [vmem:[#allocation10_spill] sm:$0xff]  ;;  %v6909_v57 = vld [vmem:[#allocation71_spill] sm:$0xff] }
 0x13b   :  { %4509 = vmatprep.subr.bf16.mxu0 %v4508_v50 }
 0x13c   :  { %4660 = vmatpush3.bf16.xpose.msra.mxu1 %v4659_v12  ;;  %v3720_v11 = vpop.f32.mrb[16].mxu0 }
 0x13d   :  { %v461_v63 = vpop.f32.mrb[17].mxu0  ;;  %3974 = vmatmul.mubr.f32.gmra.mrb[116].mxu0 %v6870_v5  ;;  %4661 = vmatprep.subr.bf16.mxu1 %v6576_v31  ;;  %v6910_v11 = vld [vmem:[#allocation20_spill] sm:$0xff] }
 0x13e   :  { %3976 = vmatprep.mubr.f32.mxu0 %v6871_v7  ;;  %v6911_v63 = vld [vmem:[#allocation22_spill] sm:$0xff] }
 0x140   :  { %v3723_v25 = vpop.f32.mrb[18].mxu0 }
 0x141   :  { %v481_v20 = vpop.f32.mrb[19].mxu0  ;;  %3977 = vmatmul.mubr.f32.gmra.mrb[118].mxu0 %v6877_v51  ;;  %v6912_v25 = vld [vmem:[#allocation72_spill] sm:$0xff] }
 0x142   :  { %4511 = vmatpush3.bf16.xpose.msra.mxu0 %v4508_v50  ;;  %3979 = vmatprep.mubr.f32.mxu0 %v6879_v59  ;;  %v6904_v50 = vld [vmem:[#allocation19_spill] sm:$0xff]  ;;  %v6918_v59 = vld [vmem:[#allocation80_spill] sm:$0xff] }
 0x143   :  { %4513 = vmatprep.subr.bf16.mxu0 %v6880_v18  ;;  %v6916_v20 = vld [vmem:[#allocation31_spill] sm:$0xff] }
 0x144   :  { %4663 = vmatpush3.bf16.xpose.msra.mxu1 %v4662_v61  ;;  %v3726_v34 = vpop.f32.mrb[20].mxu0  ;;  %v6915_v61 = vld [vmem:[#allocation79_spill] sm:$0xff] }
 0x145   :  { %v501_v41 = vpop.f32.mrb[21].mxu0  ;;  %3980 = vmatmul.mubr.f32.gmra.mrb[120].mxu0 %v6881_v54  ;;  %4664 = vmatprep.subr.bf16.mxu1 %v6576_v31  ;;  %v6920_v54 = vld [vmem:[#allocation82_spill] sm:$0xff] }
 0x146   :  { %4014 = vmatprep.mubr.f32.mxu0 %v6882_v1 }
 0x148   :  { %v3729_v49 = vpop.f32.mrb[22].mxu0 }
 0x149   :  { %v521_v23 = vpop.f32.mrb[23].mxu0  ;;  %4015 = vmatmul.mubr.f32.vlgmr.msra.gmra.mrb[0].mxu0 %v6883_v38  ;;  %v6921_v49 = vld [vmem:[#allocation89_spill] sm:$0xff] }
 0x14a   :  { %4515 = vmatpush3.bf16.xpose.msra.mxu0 %v6880_v18  ;;  %4017 = vmatprep.mubr.f32.mxu0 %v6884_v22  ;;  %v6919_v18 = vld [vmem:[#allocation81_spill] sm:$0xff] }
 0x14b   :  { %4315 = vmatmul.mubr.msk.f32.vlgmr.msra.gmra.mrb[0].mxu1 %vm69_vm0, %v6885_v26  ;;  %4517 = vmatprep.subr.bf16.mxu0 %v6886_v27  ;;  %v6922_v23 = vld [vmem:[#allocation33_spill] sm:$0xff] }
 0x14c   :  { %4666 = vmatpush3.bf16.xpose.msra.mxu1 %v6887_v14  ;;  %v3732_v2 = vpop.f32.mrb[24].mxu0  ;;  %4349 = vmatprep.mubr.msk.f32.mxu1 %vm4751_vm1, %v6644_v40 }
 0x14d   :  { %v541_v52 = vpop.f32.mrb[25].mxu0  ;;  %4018 = vmatmul.mubr.f32.gmra.mrb[122].mxu0 %v6888_v60  ;;  %4667 = vmatprep.subr.bf16.mxu1 %v6576_v31 }
 0x14e   :  { %4020 = vmatprep.mubr.f32.mxu0 %v6889_v6  ;;  %v6924_v52 = vld [vmem:[#allocation92_spill] sm:$0xff] }
 0x150   :  { %v3735_v32 = vpop.f32.mrb[26].mxu0 }
 0x151   :  { %v561_v44 = vpop.f32.mrb[27].mxu0  ;;  %4021 = vmatmul.mubr.f32.gmra.mrb[124].mxu0 %v6890_v16  ;;  %v6925_v32 = vld [vmem:[#allocation93_spill] sm:$0xff] }
 0x152   :  { %4519 = vmatpush3.bf16.xpose.msra.mxu0 %v6886_v27  ;;  %4023 = vmatprep.mubr.f32.mxu0 %v6891_v43  ;;  %v6923_v27 = vld [vmem:[#allocation35_spill] sm:$0xff] }
 0x153   :  { %4521 = vmatprep.subr.bf16.mxu0 %v6892_v29 }
 0x154   :  { %4669 = vmatpush3.bf16.xpose.msra.mxu1 %v6893_v24  ;;  %v3738_v40 = vpop.f32.mrb[28].mxu0  ;;  %v6926_v24 = vld [vmem:[#allocation94_spill] sm:$0xff] }
 0x155   :  { %v581_v15 = vpop.f32.mrb[29].mxu0  ;;  %4024 = vmatmul.mubr.f32.gmra.mrb[126].mxu0 %v6894_v46  ;;  %4670 = vmatprep.subr.bf16.mxu1 %v6576_v31  ;;  %v6927_v40 = vld [vmem:[#allocation95_spill] sm:$0xff] }
 0x156   :  { %4026 = vmatprep.mubr.f32.mxu0 %v6895_v33  ;;  %v6928_v15 = vld [vmem:[#allocation38_spill] sm:$0xff] }
 0x158   :  { %v3741_v62 = vpop.f32.mrb[30].mxu0 }
 0x159   :  { %v601_v55 = vpop.f32.mrb[31].mxu0  ;;  %4027 = vmatmul.mubr.f32.gmra.mrb[128].mxu0 %v6896_v28 }
 0x15a   :  { %4523 = vmatpush3.bf16.xpose.msra.mxu0 %v6892_v29  ;;  %4029 = vmatprep.mubr.f32.mxu0 %v6897_v53 }
 0x15b   :  { %4525 = vmatprep.subr.bf16.mxu0 %v6898_v4 }
 0x15c   :  { %4672 = vmatpush3.bf16.xpose.msra.mxu1 %v6899_v42 }
 0x15d   :  { %4030 = vmatmul.mubr.f32.gmra.mrb[130].mxu0 %v6900_v10  ;;  %4673 = vmatprep.subr.bf16.mxu1 %v6576_v31 }
 0x15e   :  { %4032 = vmatprep.mubr.f32.mxu0 %v6901_v39 }
 0x160   :  { %v3779_v48 = vpop.f32.mrb[32].mxu0 }
 0x161   :  { %v774_v37 = vpop.f32.mrb[33].mxu0  ;;  %4033 = vmatmul.mubr.f32.gmra.mrb[132].mxu0 %v6902_v3 }
 0x162   :  { %4527 = vmatpush3.bf16.xpose.msra.mxu0 %v6898_v4  ;;  %4035 = vmatprep.mubr.f32.mxu0 %v6903_v47  ;;  %v6929_v4 = vld [vmem:[#allocation98_spill] sm:$0xff] }
 0x163   :  { %4529 = vmatprep.subr.bf16.mxu0 %v6904_v50 }
 0x164   :  { %4675 = vmatpush3.bf16.xpose.msra.mxu1 %v6905_v19  ;;  %v3782_v30 = vpop.f32.mrb[34].mxu0 }
 0x165   :  { %v786_v0 = vpop.f32.mrb[35].mxu0  ;;  %4036 = vmatmul.mubr.f32.gmra.mrb[134].mxu0 %v6906_v58  ;;  %4676 = vmatprep.subr.bf16.mxu1 %v6576_v31 }
 0x166   :  { %4038 = vmatprep.mubr.f32.mxu0 %v6907_v17 }
 0x168   :  { %v3785_v12 = vpop.f32.mrb[36].mxu0 }
 0x169   :  { %v798_v56 = vpop.f32.mrb[37].mxu0  ;;  %4039 = vmatmul.mubr.f32.gmra.mrb[136].mxu0 %v6908_v21 }
 0x16a   :  { %4531 = vmatpush3.bf16.xpose.msra.mxu0 %v6904_v50  ;;  %4041 = vmatprep.mubr.f32.mxu0 %v6909_v57 }
 0x16b   :  { %4533 = vmatprep.subr.bf16.mxu0 %v6910_v11 }
 0x16c   :  { %4678 = vmatpush3.bf16.xpose.msra.mxu1 %v6911_v63  ;;  %v3788_v5 = vpop.f32.mrb[38].mxu0 }
 0x16d   :  { %v810_v7 = vpop.f32.mrb[39].mxu0  ;;  %4042 = vmatmul.mubr.f32.gmra.mrb[138].mxu0 %v6912_v25  ;;  %4679 = vmatprep.subr.bf16.mxu1 %v6576_v31 }
 0x16e   :  { %4044 = vmatprep.mubr.f32.mxu0 %v6913_v9 }
 0x170   :  { %v3791_v45 = vpop.f32.mrb[40].mxu0 }
 0x171   :  { %v822_v35 = vpop.f32.mrb[41].mxu0  ;;  %4045 = vmatmul.mubr.f32.gmra.mrb[140].mxu0 %v6914_v8 }
 0x172   :  { %4535 = vmatpush3.bf16.xpose.msra.mxu0 %v6910_v11  ;;  %4047 = vmatprep.mubr.f32.mxu0 %v6915_v61 }
 0x173   :  { %4537 = vmatprep.subr.bf16.mxu0 %v6916_v20 }
 0x174   :  { %4681 = vmatpush3.bf16.xpose.msra.mxu1 %v6917_v13  ;;  %v3794_v51 = vpop.f32.mrb[42].mxu0 }
 0x175   :  { %v834_v36 = vpop.f32.mrb[43].mxu0  ;;  %4048 = vmatmul.mubr.f32.gmra.mrb[142].mxu0 %v6918_v59  ;;  %4682 = vmatprep.subr.bf16.mxu1 %v6576_v31 }
 0x176   :  { %4050 = vmatprep.mubr.f32.mxu0 %v6919_v18 }
 0x178   :  { %v3797_v34 = vpop.f32.mrb[44].mxu0 }
 0x179   :  { %v846_v41 = vpop.f32.mrb[45].mxu0  ;;  %4051 = vmatmul.mubr.f32.gmra.mrb[144].mxu0 %v6920_v54  ;;  %v4754_v34 = vmov -1e+30  }
 0x17a   :  { %4539 = vmatpush3.bf16.xpose.msra.mxu0 %v6916_v20  ;;  %4053 = vmatprep.mubr.f32.mxu0 %v6921_v49  ;;  %19 = vst [vmem:[#allocation2] sm:$0x1] %v4754_v34 }
 0x17b   :  { %4541 = vmatprep.subr.bf16.mxu0 %v6922_v23 }
 0x17c   :  { %4684 = vmatpush3.bf16.xpose.msra.mxu1 %v6923_v27  ;;  %v3800_v14 = vpop.f32.mrb[46].mxu0 }
 0x17d   :  { %v858_v2 = vpop.f32.mrb[47].mxu0  ;;  %4054 = vmatmul.mubr.f32.gmra.mrb[146].mxu0 %v6924_v52  ;;  %4685 = vmatprep.subr.bf16.mxu1 %v6576_v31 }
 0x17e   :  { %4056 = vmatprep.mubr.f32.mxu0 %v6925_v32 }
 0x180   :  { %v3803_v44 = vpop.f32.mrb[48].mxu0 }
 0x181   :  { %v870_v29 = vpop.f32.mrb[49].mxu0  ;;  %4057 = vmatmul.mubr.f32.gmra.mrb[148].mxu0 %v6926_v24 }
 0x182   :  { %4543 = vmatpush3.bf16.xpose.msra.mxu0 %v6922_v23  ;;  %4059 = vmatprep.mubr.f32.mxu0 %v6927_v40 }
 0x184   :  { %4687 = vmatpush3.bf16.xpose.msra.mxu1 %v6928_v15  ;;  %v3806_v62 = vpop.f32.mrb[50].mxu0 }
 0x185   :  { %v882_v55 = vpop.f32.mrb[51].mxu0  ;;  %4060 = vmatmul.mubr.f32.gmra.mrb[150].mxu0 %v6929_v4 }
 0x186   :  { %4094 = vmatprep.mubr.f32.mxu0 %v6882_v1 }
 0x188   :  { %v3809_v42 = vpop.f32.mrb[52].mxu0 }
 0x189   :  { %v894_v31 = vpop.f32.mrb[53].mxu0  ;;  %4095 = vmatmul.mubr.f32.vlgmr.msra.gmra.mrb[0].mxu0 %v6883_v38 }
 0x18a   :  { %4097 = vmatprep.mubr.f32.mxu0 %v6884_v22 }
 0x18b   :  { %4350 = vmatmul.mubr.msk.f32.vlgmr.msra.gmra.mrb[0].mxu1 %vm69_vm0, %v6885_v26 }
 0x18c   :  { %v3812_v48 = vpop.f32.mrb[54].mxu0 }
 0x18d   :  { %v906_v37 = vpop.f32.mrb[55].mxu0  ;;  %4098 = vmatmul.mubr.f32.gmra.mrb[152].mxu0 %v6888_v60 }
 0x18e   :  { %4100 = vmatprep.mubr.f32.mxu0 %v6889_v6 }
 0x190   :  { %v3815_v50 = vpop.f32.mrb[56].mxu0 }
 0x191   :  { %v918_v19 = vpop.f32.mrb[57].mxu0  ;;  %4101 = vmatmul.mubr.f32.gmra.mrb[154].mxu0 %v6890_v16 }
 0x192   :  { %4103 = vmatprep.mubr.f32.mxu0 %v6891_v43 }
 0x194   :  { %v3818_v1 = vpop.f32.mrb[58].mxu0 }
 0x195   :  { %v930_v30 = vpop.f32.mrb[59].mxu0  ;;  %4104 = vmatmul.mubr.f32.gmra.mrb[156].mxu0 %v6894_v46 }
 0x196   :  { %4106 = vmatprep.mubr.f32.mxu0 %v6895_v33 }
 0x198   :  { %v3821_v38 = vpop.f32.mrb[60].mxu0 }
 0x199   :  { %v942_v22 = vpop.f32.mrb[61].mxu0  ;;  %4107 = vmatmul.mubr.f32.gmra.mrb[158].mxu0 %v6896_v28 }
 0x19a   :  { %4109 = vmatprep.mubr.f32.mxu0 %v6897_v53 }
 0x19d   :  { %4110 = vmatmul.mubr.f32.gmra.mrb[160].mxu0 %v6900_v10 }
 0x19e   :  { %4112 = vmatprep.mubr.f32.mxu0 %v6901_v39 }
 0x1a0   :  { %v3859_v26 = vpop.f32.mrb[62].mxu0 }
 0x1a1   :  { %v1066_v60 = vpop.f32.mrb[63].mxu0  ;;  %4113 = vmatmul.mubr.f32.gmra.mrb[162].mxu0 %v6902_v3 }
 0x1a2   :  { %4115 = vmatprep.mubr.f32.mxu0 %v6903_v47 }
 0x1a4   :  { %v3862_v6 = vpop.f32.mrb[64].mxu0 }
 0x1a5   :  { %v1080_v16 = vpop.f32.mrb[65].mxu0  ;;  %4116 = vmatmul.mubr.f32.gmra.mrb[164].mxu0 %v6906_v58 }
 0x1a6   :  { %4118 = vmatprep.mubr.f32.mxu0 %v6907_v17 }
 0x1a8   :  { %v3865_v43 = vpop.f32.mrb[66].mxu0 }
 0x1a9   :  { %v1094_v46 = vpop.f32.mrb[67].mxu0  ;;  %4119 = vmatmul.mubr.f32.gmra.mrb[166].mxu0 %v6908_v21 }
 0x1aa   :  { %4121 = vmatprep.mubr.f32.mxu0 %v6909_v57 }
 0x1ac   :  { %v3868_v33 = vpop.f32.mrb[68].mxu0 }
 0x1ad   :  { %v1108_v28 = vpop.f32.mrb[69].mxu0  ;;  %4122 = vmatmul.mubr.f32.gmra.mrb[168].mxu0 %v6912_v25 }
 0x1ae   :  { %4124 = vmatprep.mubr.f32.mxu0 %v6913_v9 }
 0x1b0   :  { %v3871_v53 = vpop.f32.mrb[70].mxu0 }
 0x1b1   :  { %v1122_v10 = vpop.f32.mrb[71].mxu0  ;;  %4125 = vmatmul.mubr.f32.gmra.mrb[170].mxu0 %v6914_v8 }
 0x1b2   :  { %4127 = vmatprep.mubr.f32.mxu0 %v6915_v61 }
 0x1b4   :  { %v3874_v39 = vpop.f32.mrb[72].mxu0 }
 0x1b5   :  { %v1136_v3 = vpop.f32.mrb[73].mxu0  ;;  %4128 = vmatmul.mubr.f32.gmra.mrb[172].mxu0 %v6918_v59 }
 0x1b6   :  { %4130 = vmatprep.mubr.f32.mxu0 %v6919_v18 }
 0x1b8   :  { %v3877_v47 = vpop.f32.mrb[74].mxu0 }
 0x1b9   :  { %v1150_v0 = vpop.f32.mrb[75].mxu0  ;;  %4131 = vmatmul.mubr.f32.gmra.mrb[174].mxu0 %v6920_v54 }
 0x1ba   :  { %4133 = vmatprep.mubr.f32.mxu0 %v6921_v49 }
 0x1bc   :  { %v3880_v58 = vpop.f32.mrb[76].mxu0 }
 0x1bd   :  { %v1164_v17 = vpop.f32.mrb[77].mxu0  ;;  %4134 = vmatmul.mubr.f32.gmra.mrb[176].mxu0 %v6924_v52 }
 0x1be   :  { %4136 = vmatprep.mubr.f32.mxu0 %v6925_v32 }
 0x1c0   :  { %v3883_v12 = vpop.f32.mrb[78].mxu0 }
 0x1c1   :  { %v1178_v56 = vpop.f32.mrb[79].mxu0  ;;  %4137 = vmatmul.mubr.f32.gmra.mrb[178].mxu0 %v6926_v24 }
 0x1c2   :  { %4139 = vmatprep.mubr.f32.mxu0 %v6927_v40 }
 0x1c4   :  { %v3886_v21 = vpop.f32.mrb[80].mxu0 }
 0x1c5   :  { %v1192_v57 = vpop.f32.mrb[81].mxu0  ;;  %4140 = vmatmul.mubr.f32.gmra.mrb[180].mxu0 %v6929_v4 }
 0x1c8   :  { %v3889_v11 = vpop.f32.mrb[82].mxu0 }
 0x1c9   :  { %v1206_v63 = vpop.f32.mrb[83].mxu0 }
 0x1cc   :  { %v3892_v5 = vpop.f32.mrb[84].mxu0 }
 0x1cd   :  { %v1220_v7 = vpop.f32.mrb[85].mxu0 }
 0x1d0   :  { %v3895_v25 = vpop.f32.mrb[86].mxu0 }
 0x1d1   :  { %v1234_v9 = vpop.f32.mrb[87].mxu0 }
 0x1d4   :  { %v3898_v45 = vpop.f32.mrb[88].mxu0 }
 0x1d5   :  { %v1248_v35 = vpop.f32.mrb[89].mxu0 }
 0x1d8   :  { %v3901_v8 = vpop.f32.mrb[90].mxu0 }
 0x1d9   :  { %v1262_v61 = vpop.f32.mrb[91].mxu0 }
 0x1e0   :  { %v3939_v20 = vpop.f32.mrb[92].mxu0 }
 0x1e1   :  { %v1374_v13 = vpop.f32.mrb[93].mxu0 }
 0x1e4   :  { %v3942_v51 = vpop.f32.mrb[94].mxu0 }
 0x1e5   :  { %v1390_v36 = vpop.f32.mrb[95].mxu0 }
 0x1e8   :  { %v3945_v59 = vpop.f32.mrb[96].mxu0 }
 0x1e9   :  { %v1406_v18 = vpop.f32.mrb[97].mxu0 }
 0x1ec   :  { %v3948_v41 = vpop.f32.mrb[98].mxu0 }
 0x1ed   :  { %v1422_v54 = vpop.f32.mrb[99].mxu0 }
 0x1f0   :  { %v3951_v49 = vpop.f32.mrb[100].mxu0 }
 0x1f1   :  { %v1438_v23 = vpop.f32.mrb[101].mxu0 }
 0x1f4   :  { %v3954_v27 = vpop.f32.mrb[102].mxu0 }
 0x1f5   :  { %v1454_v14 = vpop.f32.mrb[103].mxu0 }
 0x1f8   :  { %v3957_v2 = vpop.f32.mrb[104].mxu0 }
 0x1f9   :  { %v1470_v52 = vpop.f32.mrb[105].mxu0 }
 0x1fc   :  { %v3960_v32 = vpop.f32.mrb[106].mxu0 }
 0x1fd   :  { %v1486_v44 = vpop.f32.mrb[107].mxu0 }
 0x200   :  { %v3963_v29 = vpop.f32.mrb[108].mxu0 }
 0x201   :  { %v1502_v24 = vpop.f32.mrb[109].mxu0 }
 0x204   :  { %v3966_v40 = vpop.f32.mrb[110].mxu0 }
 0x205   :  { %v1518_v15 = vpop.f32.mrb[111].mxu0 }
 0x208   :  { %v3969_v62 = vpop.f32.mrb[112].mxu0 }
 0x209   :  { %v1534_v55 = vpop.f32.mrb[113].mxu0 }
 0x20c   :  { %v3972_v4 = vpop.f32.mrb[114].mxu0 }
 0x20d   :  { %v1550_v42 = vpop.f32.mrb[115].mxu0 }
 0x210   :  { %v3975_v31 = vpop.f32.mrb[116].mxu0 }
 0x211   :  { %v1566_v48 = vpop.f32.mrb[117].mxu0 }
 0x214   :  { %v3978_v37 = vpop.f32.mrb[118].mxu0 }
 0x215   :  { %v1582_v50 = vpop.f32.mrb[119].mxu0 }
 0x218   :  { %v3981_v19 = vpop.f32.mrb[120].mxu0 }
 0x219   :  { %v1598_v1 = vpop.f32.mrb[121].mxu0  ;;  %v2362_v19 = vlaneseq }
 0x220   :  { %v4019_v30 = vpop.f32.mrb[122].mxu0 }
 0x221   :  { %v1737_v38 = vpop.f32.mrb[123].mxu0 }
 0x224   :  { %v4022_v22 = vpop.f32.mrb[124].mxu0 }
 0x225   :  { %v1749_v26 = vpop.f32.mrb[125].mxu0 }
 0x226   :  { %v2363_v26 = vshrl.u32 %v2362_v19, 7 }
 0x228   :  { %v4025_v60 = vpop.f32.mrb[126].mxu0 }
 0x229   :  { %v1761_v6 = vpop.f32.mrb[127].mxu0 }
 0x22c   :  { %v4028_v16 = vpop.f32.mrb[128].mxu0 }
 0x22d   :  { %v1773_v43 = vpop.f32.mrb[129].mxu0  ;;  %v6315_v16 = vld [vmem:[#allocation2] sm:$0x1] }
 0x230   :  { %v4031_v46 = vpop.f32.mrb[130].mxu0 }
 0x231   :  { %v1785_v33 = vpop.f32.mrb[131].mxu0 }
 0x232   :  { %v2364_v33 = vsub.s32 0, %v2363_v26 }
 0x234   :  { %v4034_v28 = vpop.f32.mrb[132].mxu0 }
 0x235   :  { %v1797_v53 = vpop.f32.mrb[133].mxu0 }
 0x238   :  { %v4037_v10 = vpop.f32.mrb[134].mxu0 }
 0x239   :  { %v1809_v39 = vpop.f32.mrb[135].mxu0 }
 0x23c   :  { %v4040_v3 = vpop.f32.mrb[136].mxu0 }
 0x23d   :  { %v1821_v47 = vpop.f32.mrb[137].mxu0 }
 0x240   :  { %v4043_v0 = vpop.f32.mrb[138].mxu0 }
 0x241   :  { %v1833_v58 = vpop.f32.mrb[139].mxu0 }
 0x244   :  { %v4046_v17 = vpop.f32.mrb[140].mxu0 }
 0x245   :  { %v1845_v12 = vpop.f32.mrb[141].mxu0 }
 0x248   :  { %v4049_v56 = vpop.f32.mrb[142].mxu0 }
 0x249   :  { %v1857_v21 = vpop.f32.mrb[143].mxu0 }
 0x24c   :  { %v4052_v57 = vpop.f32.mrb[144].mxu0 }
 0x24d   :  { %v1869_v11 = vpop.f32.mrb[145].mxu0 }
 0x250   :  { %v4055_v63 = vpop.f32.mrb[146].mxu0 }
 0x251   :  { %v1881_v5 = vpop.f32.mrb[147].mxu0 }
 0x254   :  { %v4058_v7 = vpop.f32.mrb[148].mxu0 }
 0x255   :  { %v1893_v25 = vpop.f32.mrb[149].mxu0 }
 0x258   :  { %v4061_v9 = vpop.f32.mrb[150].mxu0 }
 0x259   :  { %v1905_v45 = vpop.f32.mrb[151].mxu0 }
 0x25c   :  { %v4096_v35 = vpop.f32.mrb[0].mxu0 }
 0x25d   :  { %v2321_v8 = vmax.f32 %v4096_v35, -1e+30  ;;  %v1998_v61 = vpop.f32.mrb[1].mxu0 }
 0x25e   :  { %v2320_v20 = vmax.f32 %v1998_v61, -1e+30  ;;  %v6313_v13 = vpop.f32.mrb[0].mxu1 }
 0x25f   :  { %v2325_v51 = vmax.f32 %v2321_v8, -1e+30  ;;  %v4351_v36 = vpop.f32.mrb[1].mxu1 }
 0x260   :  { %v2324_v59 = vmax.f32 %v2320_v20, -1e+30  ;;  %v4099_v18 = vpop.f32.mrb[152].mxu0 }
 0x261   :  { %v2329_v34 = vmax.f32 %v2325_v51, -1e+30  ;;  %v2010_v41 = vpop.f32.mrb[153].mxu0 }
 0x262   :  { %v2328_v54 = vmax.f32 %v2324_v59, -1e+30 }
 0x263   :  { %v2333_v49 = vmax.f32 %v2329_v34, -1e+30 }
 0x264   :  { %v2332_v23 = vmax.f32 %v2328_v54, -1e+30  ;;  %v4102_v27 = vpop.f32.mrb[154].mxu0 }
 0x265   :  { %v2337_v14 = vmax.f32 %v2333_v49, -1e+30  ;;  %v2022_v2 = vpop.f32.mrb[155].mxu0 }
 0x266   :  { %v2336_v52 = vmax.f32 %v2332_v23, -1e+30 }
 0x267   :  { %v2341_v32 = vmax.f32 %v2337_v14, -1e+30 }
 0x268   :  { %v2340_v44 = vmax.f32 %v2336_v52, -1e+30  ;;  %v4105_v29 = vpop.f32.mrb[156].mxu0 }
 0x269   :  { %v2345_v24 = vmax.f32 %v2341_v32, -1e+30  ;;  %v2034_v40 = vpop.f32.mrb[157].mxu0 }
 0x26a   :  { %v2344_v15 = vmax.f32 %v2340_v44, -1e+30 }
 0x26c   :  { %v2348_v62 = vmax.f32 %v2344_v15, %v2345_v24  ;;  %v4108_v55 = vpop.f32.mrb[158].mxu0 }
 0x26d   :  { %v2046_v4 = vpop.f32.mrb[159].mxu0 }
 0x26e   :  { %v2350_v42 = vmax.f32 %v2348_v62, -1e+30 }
 0x270   :  { %v2351_v31 = vrot.slane %v2350_v42, 4  ;;  %v4111_v48 = vpop.f32.mrb[160].mxu0 }
 0x271   :  { %v2058_v37 = vpop.f32.mrb[161].mxu0 }
 0x272   :  { %v2352_v50 = vmax.f32 %v2350_v42, %v2351_v31 }
 0x274   :  { %v2353_v1 = vrot.slane %v2352_v50, 2  ;;  %v4114_v30 = vpop.f32.mrb[162].mxu0 }
 0x275   :  { %v2070_v38 = vpop.f32.mrb[163].mxu0 }
 0x276   :  { %v2354_v22 = vmax.f32 %v2352_v50, %v2353_v1 }
 0x278   :  { %v2355_v60 = vrot.slane %v2354_v22, 1  ;;  %v4117_v6 = vpop.f32.mrb[164].mxu0 }
 0x279   :  { %v2082_v43 = vpop.f32.mrb[165].mxu0 }
 0x27a   :  { %v2356_v46 = vmax.f32 %v2354_v22, %v2355_v60 }
 0x27c   :  { %v2357_v28 = vmax.f32 %v6315_v16, %v2356_v46  ;;  %v4120_v53 = vpop.f32.mrb[166].mxu0 }
 0x27d   :  { %v2094_v10 = vpop.f32.mrb[167].mxu0 }
 0x27e   :  { %v2358_v39 = vsub.f32 %v6315_v16, %v2357_v28  ;;  %v2365_v3 = vrot.slane %v2357_v28, %v2364_v33  ;;  %2504 = vst [vmem:[#allocation2] sm:$0x1] %v2357_v28  ;;  %v2463_v10 = vld [vmem:[#allocation3] sm:$0x1] }
 0x280   :  { %v2367_v47 = vsub.f32 %v1998_v61, %v2365_v3  ;;  %v2368_v0 = vsub.f32 %v4096_v35, %v2365_v3  ;;  %v2369_v58 = vsub.f32 -1e+30, %v2365_v3  ;;  %v4123_v17 = vpop.f32.mrb[168].mxu0  ;;  %v2359_v26 = vmul.f32 1.442695, %v2358_v39 }
 0x281   :  { %v2106_v12 = vpop.f32.mrb[169].mxu0 }
 0x282   :  { %v2399_v56 = vmul.f32 1.442695, %v2367_v47  ;;  %v2401_v21 = vmul.f32 1.442695, %v2368_v0  ;;  %v2403_v57 = vmul.f32 1.442695, %v2369_v58 }
 0x284   :  { %4715 = vpow2.f32 %v2399_v56  ;;  %v4126_v11 = vpop.f32.mrb[170].mxu0 }
 0x285   :  { %4717 = vpow2.f32 %v2401_v21  ;;  %v2118_v63 = vpop.f32.mrb[171].mxu0  ;;  %v3248_v39 = vld [vmem:[#allocation2] sm:$0x1] }
 0x286   :  { %4719 = vpow2.f32 %v2403_v57 }
 0x287   :  { %4721 = vpow2.f32 %v2359_v26 }
 0x288   :  { %v4129_v5 = vpop.f32.mrb[172].mxu0 }
 0x289   :  { %v2130_v7 = vpop.f32.mrb[173].mxu0 }
 0x28c   :  { %v4132_v25 = vpop.f32.mrb[174].mxu0 }
 0x28d   :  { %v2142_v9 = vpop.f32.mrb[175].mxu0 }
 0x28e   :  { %v4716_v45 = vpop.eup %4715 }
 0x28f   :  { %v4718_v8 = vpop.eup %4717 }
 0x290   :  { %v2465_v20 = vadd.f32 %v4718_v8, %v4716_v45  ;;  %v4135_v61 = vpop.f32.mrb[176].mxu0  ;;  %v4720_v35 = vpop.eup %4719 }
 0x291   :  { %v2154_v51 = vpop.f32.mrb[177].mxu0  ;;  %v4722_v53 = vpop.eup %4721 }
 0x292   :  { %v2466_v36 = vadd.f32 %v4720_v35, %v2465_v20  ;;  %v2464_v47 = vmul.f32 %v4722_v53, %v2463_v10 }
 0x294   :  { %v2467_v59 = vadd.f32 %v4720_v35, %v2466_v36  ;;  %v4138_v18 = vpop.f32.mrb[178].mxu0 }
 0x295   :  { %v2166_v34 = vpop.f32.mrb[179].mxu0 }
 0x296   :  { %v2468_v41 = vadd.f32 %v4720_v35, %v2467_v59 }
 0x298   :  { %v2469_v54 = vadd.f32 %v4720_v35, %v2468_v41  ;;  %v4141_v49 = vpop.f32.mrb[180].mxu0 }
 0x299   :  { %v2178_v23 = vpop.f32.mrb[181].mxu0 }
 0x29a   :  { %v2470_v27 = vadd.f32 %v4720_v35, %v2469_v54 }
 0x29c   :  { %v2471_v14 = vadd.f32 %v4720_v35, %v2470_v27 }
 0x29e   :  { %v2472_v2 = vadd.f32 %v4720_v35, %v2471_v14 }
 0x2a0   :  { %v2473_v52 = vadd.f32 %v4720_v35, %v2472_v2 }
 0x2a2   :  { %v2474_v32 = vadd.f32 %v4720_v35, %v2473_v52 }
 0x2a4   :  { %v2475_v44 = vadd.f32 %v4720_v35, %v2474_v32 }
 0x2a6   :  { %v2476_v29 = vadd.f32 %v4720_v35, %v2475_v44 }
 0x2a8   :  { %v2477_v24 = vadd.f32 %v4720_v35, %v2476_v29 }
 0x2aa   :  { %v2478_v40 = vadd.f32 %v4720_v35, %v2477_v24 }
 0x2ac   :  { %v2479_v15 = vadd.f32 %v4720_v35, %v2478_v40 }
 0x2ae   :  { %v2480_v62 = vadd.f32 %v4720_v35, %v2479_v15 }
 0x2b0   :  { %v2481_v55 = vadd.f32 %v4720_v35, %v2480_v62 }
 0x2b2   :  { %v2482_v4 = vadd.f32 %v4720_v35, %v2481_v55 }
 0x2b4   :  { %v2483_v42 = vadd.f32 %v4720_v35, %v2482_v4 }
 0x2b6   :  { %v2484_v31 = vadd.f32 %v4720_v35, %v2483_v42 }
 0x2b8   :  { %v2485_v48 = vadd.f32 %v4720_v35, %v2484_v31 }
 0x2ba   :  { %v2486_v37 = vadd.f32 %v4720_v35, %v2485_v48 }
 0x2bc   :  { %v2487_v50 = vadd.f32 %v4720_v35, %v2486_v37 }
 0x2be   :  { %v2488_v19 = vadd.f32 %v4720_v35, %v2487_v50 }
 0x2c0   :  { %v2489_v1 = vadd.f32 %v4720_v35, %v2488_v19 }
 0x2c2   :  { %v2490_v30 = vadd.f32 %v4720_v35, %v2489_v1 }
 0x2c4   :  { %v2491_v38 = vadd.f32 %v4720_v35, %v2490_v30 }
 0x2c6   :  { %v2492_v22 = vadd.f32 %v4720_v35, %v2491_v38 }
 0x2c8   :  { %v2493_v60 = vadd.f32 %v4720_v35, %v2492_v22 }
 0x2ca   :  { %v2494_v6 = vadd.f32 %v4720_v35, %v2493_v60 }
 0x2cc   :  { %v2495_v16 = vadd.f32 %v4720_v35, %v2494_v6 }
 0x2ce   :  { %v2496_v43 = vrot.slane %v2495_v16, 4 }
 0x2d0   :  { %v2497_v46 = vadd.f32 %v2496_v43, %v2495_v16 }
 0x2d2   :  { %v2498_v33 = vrot.slane %v2497_v46, 2 }
 0x2d4   :  { %v2499_v28 = vadd.f32 %v2498_v33, %v2497_v46 }
 0x2d6   :  { %v2500_v3 = vrot.slane %v2499_v28, 1 }
 0x2d8   :  { %v2501_v0 = vadd.f32 %v2500_v3, %v2499_v28 }
 0x2da   :  { %v2502_v58 = vadd.f32 %v2501_v0, %v2464_v47 }
 0x2dc   :  { %2503 = vst [vmem:[#allocation3] sm:$0x1] %v2502_v58 }
 0x2e3   :  { %v3249_v17 = vld [vmem:[#allocation3] sm:$0x1] }
 0x2e4   :  { %4723 = vlog2.f32 %v3249_v17 }
 0x2ee   :  { %v4724_v12 = vpop.eup %4723 }
 0x2ef   :  { %v3251_v56 = vmul.f32 0.6931472, %v4724_v12 }
 0x2f1   :  { %v3252_v21 = vadd.f32 %v3251_v56, %v3248_v39 }
 0x2f3   :  { %v3253_v57 = vsub.f32 %v3252_v21, %v6313_v13 }
 0x2f5   :  { %3254 = vst [vmem:[#allocation4] sm:$0x1] %v3253_v57 }
 0x2f6   :  { %4736 = shalt.err (!%p4733_p4)
}
 0x2f7   :  { %s4737_s4 = scalar_lea.hbm %s6335_s3, 16 }
 0x2f8   :  { %p4738_p5 = scmp.ne.s32.totalorder %s6335_s3, %s4737_s4  ;;  %p4741_p6 = scmp.lt.u32.totalorder %s4737_s4, %s6335_s3 }
 0x2fa   :  { %p4743_p7 = pnand %p4741_p6, %p4738_p5 }
 0x2fc   :  { %4746 = shalt.err (!%p4743_p7)
}
 0x2fd   :  { %3264 = dma.vmem_to_hbm [thread:$0]  %s3262_s26, 16, %s6335_s3, [#allocation5]  }
 0x2fe   :  { %4747 = dma.done.wait [#allocation5], 16  }
 0x2ff   :  { %4748 = vsyncadd [#allocation5], 4294967280 }
 0x300   :  { %3268 = vsyncpa [#allocation5], 1 }

</bundles_post_ra>
